<compile_context>
chip_gen: v6e
topology: v6e:2x2x1
jax: 0.10.0
libtpu: 0.0.40
codegen_flags: <defaults>
</compile_context>

<pallas_src>
import functools
import math

import jax
import jax.numpy as jnp
from jax.experimental import pallas as pl
from jax.experimental.pallas import tpu as pltpu


# ---------------------------------------------------------------------------
# helpers
# ---------------------------------------------------------------------------

def _pick_tile(dim, pref):
    """Largest tile <= pref that divides dim (falls back to the full dim)."""
    t = min(pref, dim)
    if dim % t == 0:
        return t
    while t > 8 and dim % t != 0:
        t //= 2
    return t if dim % t == 0 else dim


# ---------------------------------------------------------------------------
# tiled linear:  y = act(x @ w + b)
# ---------------------------------------------------------------------------

def _linear_kernel(x_ref, w_ref, b_ref, o_ref, acc_ref, *, activation):
    @pl.when(pl.program_id(2) == 0)
    def _():
        acc_ref[...] = jnp.zeros_like(acc_ref)

    acc_ref[...] += jnp.dot(x_ref[...], w_ref[...],
                            preferred_element_type=jnp.float32)

    @pl.when(pl.program_id(2) == pl.num_programs(2) - 1)
    def _():
        y = acc_ref[...] + b_ref[...]           # f32 epilogue
        if activation == "gelu":
            y = jax.nn.gelu(y, approximate=True)
        elif activation == "tanh":
            y = jnp.tanh(y)
        o_ref[...] = y.astype(o_ref.dtype)


def linear(x, w, b, activation="none", out_dtype=jnp.bfloat16):
    """x: (M, K) bf16, w: (K, N) bf16, b: (N,) f32 -> (M, N)."""
    M, K = x.shape
    N = w.shape[1]
    tm = _pick_tile(M, 256)
    tn = _pick_tile(N, 256)
    tk = _pick_tile(K, 512)
    grid = (M // tm, N // tn, K // tk)
    return pl.pallas_call(
        functools.partial(_linear_kernel, activation=activation),
        out_shape=jax.ShapeDtypeStruct((M, N), out_dtype),
        grid=grid,
        in_specs=[
            pl.BlockSpec((tm, tk), lambda i, j, k: (i, k)),
            pl.BlockSpec((tk, tn), lambda i, j, k: (k, j)),
            pl.BlockSpec((1, tn), lambda i, j, k: (0, j)),
        ],
        out_specs=pl.BlockSpec((tm, tn), lambda i, j, k: (i, j)),
        scratch_shapes=[pltpu.VMEM((tm, tn), jnp.float32)],
        compiler_params=pltpu.CompilerParams(
            dimension_semantics=("parallel", "parallel", "arbitrary"),
            vmem_limit_bytes=32 * 1024 * 1024),
    )(x, w, b.reshape(1, N))


# ---------------------------------------------------------------------------
# fused FFN:  y = gelu(x @ w1 + b1) @ w2 + b2   (intermediate stays in VMEM)
# ---------------------------------------------------------------------------

def _ffn_kernel(x_ref, w1_ref, b1_ref, w2_ref, b2_ref, o_ref):
    h = jnp.dot(x_ref[...], w1_ref[...],
                preferred_element_type=jnp.float32) + b1_ref[...]
    h = jax.nn.gelu(h, approximate=True)
    y = jnp.dot(h.astype(w2_ref.dtype), w2_ref[...],
                preferred_element_type=jnp.float32) + b2_ref[...]
    o_ref[...] = y.astype(o_ref.dtype)


def ffn(x, w1, b1, w2, b2, out_dtype=jnp.bfloat16):
    M, H = x.shape
    I = w1.shape[1]
    tm = _pick_tile(M, 256)
    return pl.pallas_call(
        _ffn_kernel,
        out_shape=jax.ShapeDtypeStruct((M, H), out_dtype),
        grid=(M // tm,),
        in_specs=[
            pl.BlockSpec((tm, H), lambda i: (i, 0)),
            pl.BlockSpec((H, I), lambda i: (0, 0)),
            pl.BlockSpec((1, I), lambda i: (0, 0)),
            pl.BlockSpec((I, H), lambda i: (0, 0)),
            pl.BlockSpec((1, H), lambda i: (0, 0)),
        ],
        out_specs=pl.BlockSpec((tm, H), lambda i: (i, 0)),
        compiler_params=pltpu.CompilerParams(
            dimension_semantics=("parallel",),
            vmem_limit_bytes=32 * 1024 * 1024),
    )(x, w1, b1.reshape(1, I), w2, b2.reshape(1, H))


# ---------------------------------------------------------------------------
# row-tiled LayerNorm (with and without residual); math in f32
# ---------------------------------------------------------------------------

def _ln_kernel(x_ref, g_ref, b_ref, o_ref):
    h = x_ref[...].astype(jnp.float32)
    mu = jnp.mean(h, axis=-1, keepdims=True)
    var = jnp.mean(jnp.square(h - mu), axis=-1, keepdims=True)
    y = (h - mu) * jax.lax.rsqrt(var + 1e-12) * g_ref[...] + b_ref[...]
    o_ref[...] = y.astype(o_ref.dtype)


def _add_ln_kernel(x_ref, r_ref, g_ref, b_ref, o_ref):
    h = x_ref[...].astype(jnp.float32) + r_ref[...].astype(jnp.float32)
    mu = jnp.mean(h, axis=-1, keepdims=True)
    var = jnp.mean(jnp.square(h - mu), axis=-1, keepdims=True)
    y = (h - mu) * jax.lax.rsqrt(var + 1e-12) * g_ref[...] + b_ref[...]
    o_ref[...] = y.astype(o_ref.dtype)


def layernorm(x, gamma, beta, out_dtype=jnp.bfloat16):
    M, H = x.shape
    tm = _pick_tile(M, 256)
    return pl.pallas_call(
        _ln_kernel,
        out_shape=jax.ShapeDtypeStruct((M, H), out_dtype),
        grid=(M // tm,),
        in_specs=[
            pl.BlockSpec((tm, H), lambda i: (i, 0)),
            pl.BlockSpec((1, H), lambda i: (0, 0)),
            pl.BlockSpec((1, H), lambda i: (0, 0)),
        ],
        out_specs=pl.BlockSpec((tm, H), lambda i: (i, 0)),
        compiler_params=pltpu.CompilerParams(dimension_semantics=("parallel",)),
    )(x, gamma.reshape(1, H), beta.reshape(1, H))


def add_layernorm(x, res, gamma, beta, out_dtype=jnp.bfloat16):
    M, H = x.shape
    tm = _pick_tile(M, 256)
    return pl.pallas_call(
        _add_ln_kernel,
        out_shape=jax.ShapeDtypeStruct((M, H), out_dtype),
        grid=(M // tm,),
        in_specs=[
            pl.BlockSpec((tm, H), lambda i: (i, 0)),
            pl.BlockSpec((tm, H), lambda i: (i, 0)),
            pl.BlockSpec((1, H), lambda i: (0, 0)),
            pl.BlockSpec((1, H), lambda i: (0, 0)),
        ],
        out_specs=pl.BlockSpec((tm, H), lambda i: (i, 0)),
        compiler_params=pltpu.CompilerParams(dimension_semantics=("parallel",)),
    )(x, res, gamma.reshape(1, H), beta.reshape(1, H))


# ---------------------------------------------------------------------------
# attention: reads head-group blocks straight from the (B*S, 3H) QKV slab and
# writes context straight into the (B*S, H) slab (no HBM head transpose).
# ---------------------------------------------------------------------------

def _attn_kernel(q_ref, k_ref, v_ref, m_ref, o_ref, *, scale, hb, dh):
    m = m_ref[0]                                     # (1, S) additive mask, f32
    ctxs = []
    for j in range(hb):                              # static unroll over group heads
        lo, hi = j * dh, (j + 1) * dh
        qj = q_ref[:, lo:hi] * scale                 # fold scale into q (S*Dh muls)
        kj = k_ref[:, lo:hi]
        vj = v_ref[:, lo:hi]
        # q @ k^T by contracting the last dims directly (no explicit K transpose)
        s = jax.lax.dot_general(qj, kj, (((1,), (1,)), ((), ())),
                                preferred_element_type=jnp.float32)      # (S, S)
        s = s + m
        s = s - jnp.max(s, axis=-1, keepdims=True)
        p = jnp.exp(s)
        p = p * pl.reciprocal(jnp.sum(p, axis=-1, keepdims=True), approx=True)
        ctxs.append(jnp.dot(p.astype(vj.dtype), vj,
                            preferred_element_type=jnp.float32))         # (S, Dh)
    # single lane-dense store of the whole (S, hb*Dh) head-group context
    o_ref[...] = jnp.concatenate(ctxs, axis=-1).astype(o_ref.dtype)


def attention(qkv, mask, *, batch, seq, heads, dh):
    """qkv: (B*S, 3H) bf16; mask: (B, 1, S) additive f32 -> ctx (B*S, H) bf16."""
    H = heads * dh
    hb = min(heads, max(1, 128 // dh))               # heads per grid step (lane-dense)
    while heads % hb:
        hb -= 1
    hg = hb * dh
    n_groups = heads // hb
    assert hg % 128 == 0 or hg == 3 * H, "head-group block must be lane-dense"
    scale = 1.0 / math.sqrt(dh)
    return pl.pallas_call(
        functools.partial(_attn_kernel, scale=scale, hb=hb, dh=dh),
        out_shape=jax.ShapeDtypeStruct((batch * seq, H), qkv.dtype),
        grid=(batch, n_groups),
        in_specs=[
            pl.BlockSpec((seq, hg), lambda b, g: (b, g)),                  # Q cols
            pl.BlockSpec((seq, hg), lambda b, g: (b, n_groups + g)),       # K cols
            pl.BlockSpec((seq, hg), lambda b, g: (b, 2 * n_groups + g)),   # V cols
            pl.BlockSpec((1, 1, seq), lambda b, g: (b, 0, 0)),             # mask
        ],
        out_specs=pl.BlockSpec((seq, hg), lambda b, g: (b, g)),
        compiler_params=pltpu.CompilerParams(
            dimension_semantics=("parallel", "parallel")),
    )(qkv, qkv, qkv, mask)


# ---------------------------------------------------------------------------
# fused pooler (dense+tanh on [CLS]) + dropout(identity) + classifier (padded)
# ---------------------------------------------------------------------------

def _head_kernel(cls_ref, pw_ref, pb_ref, ow_ref, ob_ref, o_ref):
    pooled = jnp.tanh(jnp.dot(cls_ref[...], pw_ref[...],
                              preferred_element_type=jnp.float32) + pb_ref[...])
    # nn.Dropout(p=0.2) on pooled_output: identity at inference time.
    logits = jnp.dot(pooled.astype(ow_ref.dtype), ow_ref[...],
                     preferred_element_type=jnp.float32) + ob_ref[...]
    o_ref[...] = logits.astype(o_ref.dtype)


def classifier_head(cls, pool_w, pool_b, out_w_pad, out_b_pad, n_classes):
    B, H = cls.shape
    n_pad = out_w_pad.shape[1]
    logits_pad = pl.pallas_call(
        _head_kernel,
        out_shape=jax.ShapeDtypeStruct((B, n_pad), jnp.float32),
        grid=(1,),
        in_specs=[
            pl.BlockSpec((B, H), lambda i: (0, 0)),
            pl.BlockSpec((H, H), lambda i: (0, 0)),
            pl.BlockSpec((1, H), lambda i: (0, 0)),
            pl.BlockSpec((H, n_pad), lambda i: (0, 0)),
            pl.BlockSpec((1, n_pad), lambda i: (0, 0)),
        ],
        out_specs=pl.BlockSpec((B, n_pad), lambda i: (0, 0)),
    )(cls, pool_w, pool_b.reshape(1, H), out_w_pad, out_b_pad.reshape(1, n_pad))
    return logits_pad[:, :n_classes]


# ---------------------------------------------------------------------------
# parameters (deterministic, synthetic) and forward pass (glue in JAX)
# ---------------------------------------------------------------------------

def init_params(key, vocab, max_pos, hidden, intermediate, n_layers, n_classes):
    keys = iter(jax.random.split(key, 64))

    def nrm(shape):
        return jax.random.normal(next(keys), shape, jnp.float32) * 0.02

    n_pad = max(128, ((n_classes + 127) // 128) * 128)   # lane-dense classifier
    out_w = nrm((hidden, n_classes))
    out_w_pad = jnp.zeros((hidden, n_pad), jnp.float32).at[:, :n_classes].set(out_w)

    params = dict(
        word_emb=nrm((vocab, hidden)),
        pos_emb=nrm((max_pos, hidden)),
        type_emb=nrm((2, hidden)),
        emb_ln_g=jnp.ones((hidden,), jnp.float32),
        emb_ln_b=jnp.zeros((hidden,), jnp.float32),
        layers=[],
        pool_w=nrm((hidden, hidden)).astype(jnp.bfloat16),
        pool_b=jnp.zeros((hidden,), jnp.float32),
        # self.tmp Linear(hidden, hidden) exists in __init__ but is unused in forward
        out_w_pad=out_w_pad.astype(jnp.bfloat16),
        out_b_pad=jnp.zeros((n_pad,), jnp.float32),
    )
    for _ in range(n_layers):
        params["layers"].append(dict(
            # fused Q/K/V projection: [wq | wk | wv] on the output dim
            wqkv=nrm((hidden, 3 * hidden)).astype(jnp.bfloat16),
            bqkv=jnp.zeros((3 * hidden,), jnp.float32),
            wo=nrm((hidden, hidden)).astype(jnp.bfloat16),
            bo=jnp.zeros((hidden,), jnp.float32),
            ln1_g=jnp.ones((hidden,), jnp.float32),
            ln1_b=jnp.zeros((hidden,), jnp.float32),
            w1=nrm((hidden, intermediate)).astype(jnp.bfloat16),
            b1=jnp.zeros((intermediate,), jnp.float32),
            w2=nrm((intermediate, hidden)).astype(jnp.bfloat16),
            b2=jnp.zeros((hidden,), jnp.float32),
            ln2_g=jnp.ones((hidden,), jnp.float32),
            ln2_b=jnp.zeros((hidden,), jnp.float32),
        ))
    return params


def bert_classifier_forward(params, input_ids, attention_mask, *, heads, n_classes):
    B, S = input_ids.shape
    H = params["word_emb"].shape[1]
    Dh = H // heads

    # Embeddings (gather is JAX glue; LN runs in Pallas, no zero-residual read)
    x = (params["word_emb"][input_ids]
         + params["pos_emb"][:S][None, :, :]
         + params["type_emb"][0][None, None, :])                         # f32 (B,S,H)
    x = layernorm(x.reshape(B * S, H), params["emb_ln_g"], params["emb_ln_b"])

    # BERT extended additive attention mask: (1 - mask) * -10000, shape (B, 1, S)
    ext_mask = ((1.0 - attention_mask.astype(jnp.float32)) * -10000.0).reshape(B, 1, S)

    for lyr in params["layers"]:
        qkv = linear(x, lyr["wqkv"], lyr["bqkv"])                        # (B*S, 3H)
        ctx = attention(qkv, ext_mask, batch=B, seq=S, heads=heads, dh=Dh)
        attn_out = linear(ctx, lyr["wo"], lyr["bo"])
        x = add_layernorm(attn_out, x, lyr["ln1_g"], lyr["ln1_b"])
        ff = ffn(x, lyr["w1"], lyr["b1"], lyr["w2"], lyr["b2"])
        x = add_layernorm(ff, x, lyr["ln2_g"], lyr["ln2_b"])

    # BERT pooler (dense + tanh on [CLS]) + dropout(identity) + classifier, fused
    cls = x.reshape(B, S, H)[:, 0, :]
    logits = classifier_head(cls, params["pool_w"], params["pool_b"],
                             params["out_w_pad"], params["out_b_pad"], n_classes)
    return logits


if __name__ == "__main__":
    VOCAB, MAX_POS = 100, 64
    HIDDEN, INTERMEDIATE, LAYERS, HEADS = 128, 256, 2, 2
    N_CLASSES = 3
    B, S = 2, 16

    key = jax.random.PRNGKey(0)
    k_params, k_ids = jax.random.split(key)
    params = init_params(k_params, VOCAB, MAX_POS, HIDDEN, INTERMEDIATE, LAYERS, N_CLASSES)

    input_ids = jax.random.randint(k_ids, (B, S), 0, VOCAB, dtype=jnp.int32)
    attention_mask = jnp.ones((B, S), dtype=jnp.int32).at[1, 12:].set(0)  # some padding

    fwd = jax.jit(functools.partial(bert_classifier_forward,
                                    heads=HEADS, n_classes=N_CLASSES))
    logits = fwd(params, input_ids, attention_mask)
    jax.block_until_ready(logits)
    assert logits.shape == (B, N_CLASSES)
    assert bool(jnp.all(jnp.isfinite(logits)))
    print("KERNEL_OK")
</pallas_src>

<mosaic_0001>
module attributes {stable_mosaic.version = 11 : i64} {
  func.func @_ln_kernel(%arg0: i32, %arg1: memref<32x128xf32, #tpu.memory_space<vmem>>, %arg2: memref<1x128xf32, #tpu.memory_space<vmem>>, %arg3: memref<1x128xf32, #tpu.memory_space<vmem>>, %arg4: memref<32x128xbf16, #tpu.memory_space<vmem>>) attributes {dimension_semantics = [#tpu.dimension_semantics<parallel>], iteration_bounds = array<i64: 1>, scalar_prefetch = 0 : i64, scratch_operands = 0 : i64, tpu.core_type = #tpu.core_type<tc>, window_params = [{transform_indices = @transform_0, window_bounds = array<i64: 32, 128>}, {pipeline_mode = #tpu.pipeline_mode<synchronous>, transform_indices = @transform_1, window_bounds = array<i64: 1, 128>}, {pipeline_mode = #tpu.pipeline_mode<synchronous>, transform_indices = @transform_2, window_bounds = array<i64: 1, 128>}, {transform_indices = @transform_3, window_bounds = array<i64: 32, 128>}]} {
    %c0 = arith.constant 0 : index
    %c0_0 = arith.constant 0 : index
    %0 = vector.load %arg1[%c0, %c0_0] : memref<32x128xf32, #tpu.memory_space<vmem>>, vector<32x128xf32>
    %cst = arith.constant dense<0.000000e+00> : vector<32xf32>
    %1 = vector.multi_reduction <add>, %0, %cst [1] : vector<32x128xf32> to vector<32xf32>
    %2 = vector.shape_cast %1 : vector<32xf32> to vector<32x1xf32>
    %cst_1 = arith.constant 1.280000e+02 : f32
    %3 = vector.broadcast %cst_1 : f32 to vector<32x1xf32>
    %4 = arith.divf %2, %3 : vector<32x1xf32>
    %5 = vector.broadcast %4 : vector<32x1xf32> to vector<32x128xf32>
    %6 = arith.subf %0, %5 : vector<32x128xf32>
    %7 = arith.mulf %6, %6 : vector<32x128xf32>
    %cst_2 = arith.constant dense<0.000000e+00> : vector<32xf32>
    %8 = vector.multi_reduction <add>, %7, %cst_2 [1] : vector<32x128xf32> to vector<32xf32>
    %9 = vector.shape_cast %8 : vector<32xf32> to vector<32x1xf32>
    %cst_3 = arith.constant 1.280000e+02 : f32
    %10 = vector.broadcast %cst_3 : f32 to vector<32x1xf32>
    %11 = arith.divf %9, %10 : vector<32x1xf32>
    %12 = vector.broadcast %4 : vector<32x1xf32> to vector<32x128xf32>
    %13 = arith.subf %0, %12 : vector<32x128xf32>
    %cst_4 = arith.constant 9.99999996E-13 : f32
    %14 = vector.broadcast %cst_4 : f32 to vector<32x1xf32>
    %15 = arith.addf %11, %14 : vector<32x1xf32>
    %16 = math.rsqrt %15 : vector<32x1xf32>
    %17 = vector.broadcast %16 : vector<32x1xf32> to vector<32x128xf32>
    %18 = arith.mulf %13, %17 : vector<32x128xf32>
    %c0_5 = arith.constant 0 : index
    %c0_6 = arith.constant 0 : index
    %19 = vector.load %arg2[%c0_5, %c0_6] : memref<1x128xf32, #tpu.memory_space<vmem>>, vector<1x128xf32>
    %20 = vector.broadcast %19 : vector<1x128xf32> to vector<32x128xf32>
    %21 = arith.mulf %18, %20 : vector<32x128xf32>
    %c0_7 = arith.constant 0 : index
    %c0_8 = arith.constant 0 : index
    %22 = vector.load %arg3[%c0_7, %c0_8] : memref<1x128xf32, #tpu.memory_space<vmem>>, vector<1x128xf32>
    %23 = vector.broadcast %22 : vector<1x128xf32> to vector<32x128xf32>
    %24 = arith.addf %21, %23 : vector<32x128xf32>
    %25 = arith.truncf %24 : vector<32x128xf32> to vector<32x128xbf16>
    %c0_9 = arith.constant 0 : index
    %c0_10 = arith.constant 0 : index
    %26 = vector.load %arg4[%c0_9, %c0_10] : memref<32x128xbf16, #tpu.memory_space<vmem>>, vector<32x128xbf16>
    tpu.vector_store %arg4[%c0_9, %c0_10], %25 {strides = array<i32>} : memref<32x128xbf16, #tpu.memory_space<vmem>>, vector<32x128xbf16>,
    return
  }
  func.func @transform_0(%arg0: i32) -> (i32, i32) {
    %c0_i32 = arith.constant 0 : i32
    %c0_i32_0 = arith.constant 0 : i32
    return %arg0, %c0_i32 : i32, i32
  }
  func.func @transform_1(%arg0: i32) -> (i32, i32) {
    %c0_i32 = arith.constant 0 : i32
    %c0_i32_0 = arith.constant 0 : i32
    %c0_i32_1 = arith.constant 0 : i32
    return %c0_i32, %c0_i32_0 : i32, i32
  }
  func.func @transform_2(%arg0: i32) -> (i32, i32) {
    %c0_i32 = arith.constant 0 : i32
    %c0_i32_0 = arith.constant 0 : i32
    %c0_i32_1 = arith.constant 0 : i32
    return %c0_i32, %c0_i32_0 : i32, i32
  }
  func.func @transform_3(%arg0: i32) -> (i32, i32) {
    %c0_i32 = arith.constant 0 : i32
    %c0_i32_0 = arith.constant 0 : i32
    return %arg0, %c0_i32 : i32, i32
  }
}

module attributes {stable_mosaic.version = 11 : i64} {
  func.func @_linear_kernel(%arg0: i32, %arg1: i32, %arg2: i32, %arg3: memref<32x128xbf16, #tpu.memory_space<vmem>>, %arg4: memref<128x128xbf16, #tpu.memory_space<vmem>>, %arg5: memref<1x128xf32, #tpu.memory_space<vmem>>, %arg6: memref<32x128xbf16, #tpu.memory_space<vmem>>, %arg7: memref<32x128xf32, #tpu.memory_space<vmem>>) attributes {dimension_semantics = [#tpu.dimension_semantics<parallel>, #tpu.dimension_semantics<parallel>, #tpu.dimension_semantics<arbitrary>], iteration_bounds = array<i64: 1, 3, 1>, scalar_prefetch = 0 : i64, scratch_operands = 1 : i64, tpu.core_type = #tpu.core_type<tc>, window_params = [{transform_indices = @transform_0, window_bounds = array<i64: 32, 128>}, {transform_indices = @transform_1, window_bounds = array<i64: 128, 128>}, {transform_indices = @transform_2, window_bounds = array<i64: 1, 128>}, {transform_indices = @transform_3, window_bounds = array<i64: 32, 128>}]} {
    %c0_i32 = arith.constant 0 : i32
    %0 = arith.cmpi eq, %arg2, %c0_i32 : i32
    %1 = arith.extui %0 : i1 to i32
    %c0_i32_0 = arith.constant 0 : i32
    %2 = arith.cmpi ne, %1, %c0_i32_0 : i32
    scf.if %2 {
      %cst_10 = arith.constant 0.000000e+00 : f32
      %12 = vector.broadcast %cst_10 : f32 to vector<32x128xf32>
      %c0_11 = arith.constant 0 : index
      %c0_12 = arith.constant 0 : index
      %13 = vector.load %arg7[%c0_11, %c0_12] : memref<32x128xf32, #tpu.memory_space<vmem>>, vector<32x128xf32>
      tpu.vector_store %arg7[%c0_11, %c0_12], %12 {strides = array<i32>} : memref<32x128xf32, #tpu.memory_space<vmem>>, vector<32x128xf32>,
    } else {
    }
    %c0 = arith.constant 0 : index
    %c0_1 = arith.constant 0 : index
    %3 = vector.load %arg7[%c0, %c0_1] : memref<32x128xf32, #tpu.memory_space<vmem>>, vector<32x128xf32>
    %c0_2 = arith.constant 0 : index
    %c0_3 = arith.constant 0 : index
    %4 = vector.load %arg3[%c0_2, %c0_3] : memref<32x128xbf16, #tpu.memory_space<vmem>>, vector<32x128xbf16>
    %c0_4 = arith.constant 0 : index
    %c0_5 = arith.constant 0 : index
    %5 = vector.load %arg4[%c0_4, %c0_5] : memref<128x128xbf16, #tpu.memory_space<vmem>>, vector<128x128xbf16>
    %cst = arith.constant dense<0.000000e+00> : vector<32x128xf32>
    %6 = tpu.matmul %4, %5, %cst {dimension_numbers = #tpu.dot_dimension_numbers<[1], [0], [0], [1], [0, 0, 1, 1], [], []>} : vector<32x128xbf16>, vector<128x128xbf16>, vector<32x128xf32> -> vector<32x128xf32>
    %7 = arith.addf %3, %6 : vector<32x128xf32>
    %c0_6 = arith.constant 0 : index
    %c0_7 = arith.constant 0 : index
    %8 = vector.load %arg7[%c0_6, %c0_7] : memref<32x128xf32, #tpu.memory_space<vmem>>, vector<32x128xf32>
    tpu.vector_store %arg7[%c0_6, %c0_7], %7 {strides = array<i32>} : memref<32x128xf32, #tpu.memory_space<vmem>>, vector<32x128xf32>,
    %c0_i32_8 = arith.constant 0 : i32
    %9 = arith.cmpi eq, %arg2, %c0_i32_8 : i32
    %10 = arith.extui %9 : i1 to i32
    %c0_i32_9 = arith.constant 0 : i32
    %11 = arith.cmpi ne, %10, %c0_i32_9 : i32
    scf.if %11 {
      %c0_10 = arith.constant 0 : index
      %c0_11 = arith.constant 0 : index
      %12 = vector.load %arg7[%c0_10, %c0_11] : memref<32x128xf32, #tpu.memory_space<vmem>>, vector<32x128xf32>
      %c0_12 = arith.constant 0 : index
      %c0_13 = arith.constant 0 : index
      %13 = vector.load %arg5[%c0_12, %c0_13] : memref<1x128xf32, #tpu.memory_space<vmem>>, vector<1x128xf32>
      %14 = vector.broadcast %13 : vector<1x128xf32> to vector<32x128xf32>
      %15 = arith.addf %12, %14 : vector<32x128xf32>
      %16 = arith.truncf %15 : vector<32x128xf32> to vector<32x128xbf16>
      %c0_14 = arith.constant 0 : index
      %c0_15 = arith.constant 0 : index
      %17 = vector.load %arg6[%c0_14, %c0_15] : memref<32x128xbf16, #tpu.memory_space<vmem>>, vector<32x128xbf16>
      tpu.vector_store %arg6[%c0_14, %c0_15], %16 {strides = array<i32>} : memref<32x128xbf16, #tpu.memory_space<vmem>>, vector<32x128xbf16>,
    } else {
    }
    return
  }
  func.func @transform_0(%arg0: i32, %arg1: i32, %arg2: i32) -> (i32, i32) {
    %c0_i32 = arith.constant 0 : i32
    return %arg0, %arg2 : i32, i32
  }
  func.func @transform_1(%arg0: i32, %arg1: i32, %arg2: i32) -> (i32, i32) {
    %c0_i32 = arith.constant 0 : i32
    return %arg2, %arg1 : i32, i32
  }
  func.func @transform_2(%arg0: i32, %arg1: i32, %arg2: i32) -> (i32, i32) {
    %c0_i32 = arith.constant 0 : i32
    %c0_i32_0 = arith.constant 0 : i32
    return %c0_i32, %arg1 : i32, i32
  }
  func.func @transform_3(%arg0: i32, %arg1: i32, %arg2: i32) -> (i32, i32) {
    %c0_i32 = arith.constant 0 : i32
    return %arg0, %arg1 : i32, i32
  }
}

module attributes {stable_mosaic.version = 11 : i64} {
  func.func @_linear_kernel(%arg0: i32, %arg1: i32, %arg2: i32, %arg3: memref<32x128xbf16, #tpu.memory_space<vmem>>, %arg4: memref<128x128xbf16, #tpu.memory_space<vmem>>, %arg5: memref<1x128xf32, #tpu.memory_space<vmem>>, %arg6: memref<32x128xbf16, #tpu.memory_space<vmem>>, %arg7: memref<32x128xf32, #tpu.memory_space<vmem>>) attributes {dimension_semantics = [#tpu.dimension_semantics<parallel>, #tpu.dimension_semantics<parallel>, #tpu.dimension_semantics<arbitrary>], iteration_bounds = array<i64: 1, 1, 1>, scalar_prefetch = 0 : i64, scratch_operands = 1 : i64, tpu.core_type = #tpu.core_type<tc>, window_params = [{transform_indices = @transform_0, window_bounds = array<i64: 32, 128>}, {transform_indices = @transform_1, window_bounds = array<i64: 128, 128>}, {transform_indices = @transform_2, window_bounds = array<i64: 1, 128>}, {transform_indices = @transform_3, window_bounds = array<i64: 32, 128>}]} {
    %c0_i32 = arith.constant 0 : i32
    %0 = arith.cmpi eq, %arg2, %c0_i32 : i32
    %1 = arith.extui %0 : i1 to i32
    %c0_i32_0 = arith.constant 0 : i32
    %2 = arith.cmpi ne, %1, %c0_i32_0 : i32
    scf.if %2 {
      %cst_10 = arith.constant 0.000000e+00 : f32
      %12 = vector.broadcast %cst_10 : f32 to vector<32x128xf32>
      %c0_11 = arith.constant 0 : index
      %c0_12 = arith.constant 0 : index
      %13 = vector.load %arg7[%c0_11, %c0_12] : memref<32x128xf32, #tpu.memory_space<vmem>>, vector<32x128xf32>
      tpu.vector_store %arg7[%c0_11, %c0_12], %12 {strides = array<i32>} : memref<32x128xf32, #tpu.memory_space<vmem>>, vector<32x128xf32>,
    } else {
    }
    %c0 = arith.constant 0 : index
    %c0_1 = arith.constant 0 : index
    %3 = vector.load %arg7[%c0, %c0_1] : memref<32x128xf32, #tpu.memory_space<vmem>>, vector<32x128xf32>
    %c0_2 = arith.constant 0 : index
    %c0_3 = arith.constant 0 : index
    %4 = vector.load %arg3[%c0_2, %c0_3] : memref<32x128xbf16, #tpu.memory_space<vmem>>, vector<32x128xbf16>
    %c0_4 = arith.constant 0 : index
    %c0_5 = arith.constant 0 : index
    %5 = vector.load %arg4[%c0_4, %c0_5] : memref<128x128xbf16, #tpu.memory_space<vmem>>, vector<128x128xbf16>
    %cst = arith.constant dense<0.000000e+00> : vector<32x128xf32>
    %6 = tpu.matmul %4, %5, %cst {dimension_numbers = #tpu.dot_dimension_numbers<[1], [0], [0], [1], [0, 0, 1, 1], [], []>} : vector<32x128xbf16>, vector<128x128xbf16>, vector<32x128xf32> -> vector<32x128xf32>
    %7 = arith.addf %3, %6 : vector<32x128xf32>
    %c0_6 = arith.constant 0 : index
    %c0_7 = arith.constant 0 : index
    %8 = vector.load %arg7[%c0_6, %c0_7] : memref<32x128xf32, #tpu.memory_space<vmem>>, vector<32x128xf32>
    tpu.vector_store %arg7[%c0_6, %c0_7], %7 {strides = array<i32>} : memref<32x128xf32, #tpu.memory_space<vmem>>, vector<32x128xf32>,
    %c0_i32_8 = arith.constant 0 : i32
    %9 = arith.cmpi eq, %arg2, %c0_i32_8 : i32
    %10 = arith.extui %9 : i1 to i32
    %c0_i32_9 = arith.constant 0 : i32
    %11 = arith.cmpi ne, %10, %c0_i32_9 : i32
    scf.if %11 {
      %c0_10 = arith.constant 0 : index
      %c0_11 = arith.constant 0 : index
      %12 = vector.load %arg7[%c0_10, %c0_11] : memref<32x128xf32, #tpu.memory_space<vmem>>, vector<32x128xf32>
      %c0_12 = arith.constant 0 : index
      %c0_13 = arith.constant 0 : index
      %13 = vector.load %arg5[%c0_12, %c0_13] : memref<1x128xf32, #tpu.memory_space<vmem>>, vector<1x128xf32>
      %14 = vector.broadcast %13 : vector<1x128xf32> to vector<32x128xf32>
      %15 = arith.addf %12, %14 : vector<32x128xf32>
      %16 = arith.truncf %15 : vector<32x128xf32> to vector<32x128xbf16>
      %c0_14 = arith.constant 0 : index
      %c0_15 = arith.constant 0 : index
      %17 = vector.load %arg6[%c0_14, %c0_15] : memref<32x128xbf16, #tpu.memory_space<vmem>>, vector<32x128xbf16>
      tpu.vector_store %arg6[%c0_14, %c0_15], %16 {strides = array<i32>} : memref<32x128xbf16, #tpu.memory_space<vmem>>, vector<32x128xbf16>,
    } else {
    }
    return
  }
  func.func @transform_0(%arg0: i32, %arg1: i32, %arg2: i32) -> (i32, i32) {
    %c0_i32 = arith.constant 0 : i32
    return %arg0, %arg2 : i32, i32
  }
  func.func @transform_1(%arg0: i32, %arg1: i32, %arg2: i32) -> (i32, i32) {
    %c0_i32 = arith.constant 0 : i32
    return %arg2, %arg1 : i32, i32
  }
  func.func @transform_2(%arg0: i32, %arg1: i32, %arg2: i32) -> (i32, i32) {
    %c0_i32 = arith.constant 0 : i32
    %c0_i32_0 = arith.constant 0 : i32
    return %c0_i32, %arg1 : i32, i32
  }
  func.func @transform_3(%arg0: i32, %arg1: i32, %arg2: i32) -> (i32, i32) {
    %c0_i32 = arith.constant 0 : i32
    return %arg0, %arg1 : i32, i32
  }
}

module attributes {stable_mosaic.version = 11 : i64} {
  func.func @_attn_kernel(%arg0: i32, %arg1: i32, %arg2: memref<16x128xbf16, #tpu.memory_space<vmem>>, %arg3: memref<16x128xbf16, #tpu.memory_space<vmem>>, %arg4: memref<16x128xbf16, #tpu.memory_space<vmem>>, %arg5: memref<1x1x16xf32, #tpu.memory_space<vmem>>, %arg6: memref<16x128xbf16, #tpu.memory_space<vmem>>) attributes {dimension_semantics = [#tpu.dimension_semantics<parallel>, #tpu.dimension_semantics<parallel>], iteration_bounds = array<i64: 2, 1>, scalar_prefetch = 0 : i64, scratch_operands = 0 : i64, tpu.core_type = #tpu.core_type<tc>, window_params = [{transform_indices = @transform_0, window_bounds = array<i64: 16, 128>}, {transform_indices = @transform_1, window_bounds = array<i64: 16, 128>}, {transform_indices = @transform_2, window_bounds = array<i64: 16, 128>}, {transform_indices = @transform_3, window_bounds = array<i64: 1, 1, 16>}, {transform_indices = @transform_4, window_bounds = array<i64: 16, 128>}]} {
    %c0 = arith.constant 0 : index
    %c0_0 = arith.constant 0 : index
    %c0_1 = arith.constant 0 : index
    %0 = vector.load %arg5[%c0, %c0_0, %c0_1] : memref<1x1x16xf32, #tpu.memory_space<vmem>>, vector<1x1x16xf32>
    %1 = vector.shape_cast %0 : vector<1x1x16xf32> to vector<1x16xf32>
    %c0_2 = arith.constant 0 : index
    %c0_3 = arith.constant 0 : index
    %2 = vector.load %arg2[%c0_2, %c0_3] : memref<16x128xbf16, #tpu.memory_space<vmem>>, vector<16x64xbf16>
    %cst = arith.constant 1.250000e-01 : bf16
    %3 = vector.broadcast %cst : bf16 to vector<16x64xbf16>
    %4 = arith.mulf %2, %3 : vector<16x64xbf16>
    %c0_4 = arith.constant 0 : index
    %c0_5 = arith.constant 0 : index
    %5 = vector.load %arg3[%c0_4, %c0_5] : memref<16x128xbf16, #tpu.memory_space<vmem>>, vector<16x64xbf16>
    %c0_6 = arith.constant 0 : index
    %c0_7 = arith.constant 0 : index
    %6 = vector.load %arg4[%c0_6, %c0_7] : memref<16x128xbf16, #tpu.memory_space<vmem>>, vector<16x64xbf16>
    %cst_8 = arith.constant dense<0.000000e+00> : vector<16x16xf32>
    %7 = tpu.matmul %4, %5, %cst_8 {dimension_numbers = #tpu.dot_dimension_numbers<[1], [1], [0], [0], [0, 0, 1, 0], [], []>} : vector<16x64xbf16>, vector<16x64xbf16>, vector<16x16xf32> -> vector<16x16xf32>
    %8 = vector.broadcast %1 : vector<1x16xf32> to vector<16x16xf32>
    %9 = arith.addf %7, %8 : vector<16x16xf32>
    %cst_9 = arith.constant dense<0xFF800000> : vector<16xf32>
    %10 = vector.multi_reduction <maximumf>, %9, %cst_9 [1] : vector<16x16xf32> to vector<16xf32>
    %11 = vector.shape_cast %10 : vector<16xf32> to vector<16x1xf32>
    %12 = vector.broadcast %11 : vector<16x1xf32> to vector<16x16xf32>
    %13 = arith.subf %9, %12 : vector<16x16xf32>
    %14 = math.exp %13 : vector<16x16xf32>
    %cst_10 = arith.constant dense<0.000000e+00> : vector<16xf32>
    %15 = vector.multi_reduction <add>, %14, %cst_10 [1] : vector<16x16xf32> to vector<16xf32>
    %16 = vector.shape_cast %15 : vector<16xf32> to vector<16x1xf32>
    %17 = tpu.reciprocal %16 {approx = true} : vector<16x1xf32> -> vector<16x1xf32>
    %18 = vector.broadcast %17 : vector<16x1xf32> to vector<16x16xf32>
    %19 = arith.mulf %14, %18 : vector<16x16xf32>
    %20 = arith.truncf %19 : vector<16x16xf32> to vector<16x16xbf16>
    %cst_11 = arith.constant dense<0.000000e+00> : vector<16x64xf32>
    %21 = tpu.matmul %20, %6, %cst_11 {dimension_numbers = #tpu.dot_dimension_numbers<[1], [0], [0], [1], [0, 0, 1, 1], [], []>} : vector<16x16xbf16>, vector<16x64xbf16>, vector<16x64xf32> -> vector<16x64xf32>
    %c0_12 = arith.constant 0 : index
    %c64 = arith.constant 64 : index
    %22 = vector.load %arg2[%c0_12, %c64] : memref<16x128xbf16, #tpu.memory_space<vmem>>, vector<16x64xbf16>
    %cst_13 = arith.constant 1.250000e-01 : bf16
    %23 = vector.broadcast %cst_13 : bf16 to vector<16x64xbf16>
    %24 = arith.mulf %22, %23 : vector<16x64xbf16>
    %c0_14 = arith.constant 0 : index
    %c64_15 = arith.constant 64 : index
    %25 = vector.load %arg3[%c0_14, %c64_15] : memref<16x128xbf16, #tpu.memory_space<vmem>>, vector<16x64xbf16>
    %c0_16 = arith.constant 0 : index
    %c64_17 = arith.constant 64 : index
    %26 = vector.load %arg4[%c0_16, %c64_17] : memref<16x128xbf16, #tpu.memory_space<vmem>>, vector<16x64xbf16>
    %cst_18 = arith.constant dense<0.000000e+00> : vector<16x16xf32>
    %27 = tpu.matmul %24, %25, %cst_18 {dimension_numbers = #tpu.dot_dimension_numbers<[1], [1], [0], [0], [0, 0, 1, 0], [], []>} : vector<16x64xbf16>, vector<16x64xbf16>, vector<16x16xf32> -> vector<16x16xf32>
    %28 = vector.broadcast %1 : vector<1x16xf32> to vector<16x16xf32>
    %29 = arith.addf %27, %28 : vector<16x16xf32>
    %cst_19 = arith.constant dense<0xFF800000> : vector<16xf32>
    %30 = vector.multi_reduction <maximumf>, %29, %cst_19 [1] : vector<16x16xf32> to vector<16xf32>
    %31 = vector.shape_cast %30 : vector<16xf32> to vector<16x1xf32>
    %32 = vector.broadcast %31 : vector<16x1xf32> to vector<16x16xf32>
    %33 = arith.subf %29, %32 : vector<16x16xf32>
    %34 = math.exp %33 : vector<16x16xf32>
    %cst_20 = arith.constant dense<0.000000e+00> : vector<16xf32>
    %35 = vector.multi_reduction <add>, %34, %cst_20 [1] : vector<16x16xf32> to vector<16xf32>
    %36 = vector.shape_cast %35 : vector<16xf32> to vector<16x1xf32>
    %37 = tpu.reciprocal %36 {approx = true} : vector<16x1xf32> -> vector<16x1xf32>
    %38 = vector.broadcast %37 : vector<16x1xf32> to vector<16x16xf32>
    %39 = arith.mulf %34, %38 : vector<16x16xf32>
    %40 = arith.truncf %39 : vector<16x16xf32> to vector<16x16xbf16>
    %cst_21 = arith.constant dense<0.000000e+00> : vector<16x64xf32>
    %41 = tpu.matmul %40, %26, %cst_21 {dimension_numbers = #tpu.dot_dimension_numbers<[1], [0], [0], [1], [0, 0, 1, 1], [], []>} : vector<16x16xbf16>, vector<16x64xbf16>, vector<16x64xf32> -> vector<16x64xf32>
    %42 = tpu.concatenate %21, %41 in 1 : vector<16x64xf32>, vector<16x64xf32> -> vector<16x128xf32>
    %43 = arith.truncf %42 : vector<16x128xf32> to vector<16x128xbf16>
    %c0_22 = arith.constant 0 : index
    %c0_23 = arith.constant 0 : index
    %44 = vector.load %arg6[%c0_22, %c0_23] : memref<16x128xbf16, #tpu.memory_space<vmem>>, vector<16x128xbf16>
    tpu.vector_store %arg6[%c0_22, %c0_23], %43 {strides = array<i32>} : memref<16x128xbf16, #tpu.memory_space<vmem>>, vector<16x128xbf16>,
    return
  }
  func.func @transform_0(%arg0: i32, %arg1: i32) -> (i32, i32) {
    %c0_i32 = arith.constant 0 : i32
    return %arg0, %arg1 : i32, i32
  }
  func.func @transform_1(%arg0: i32, %arg1: i32) -> (i32, i32) {
    %c1_i32 = arith.constant 1 : i32
    %0 = arith.addi %c1_i32, %arg1 : i32
    %c0_i32 = arith.constant 0 : i32
    return %arg0, %0 : i32, i32
  }
  func.func @transform_2(%arg0: i32, %arg1: i32) -> (i32, i32) {
    %c2_i32 = arith.constant 2 : i32
    %0 = arith.addi %c2_i32, %arg1 : i32
    %c0_i32 = arith.constant 0 : i32
    return %arg0, %0 : i32, i32
  }
  func.func @transform_3(%arg0: i32, %arg1: i32) -> (i32, i32, i32) {
    %c0_i32 = arith.constant 0 : i32
    %c0_i32_0 = arith.constant 0 : i32
    %c0_i32_1 = arith.constant 0 : i32
    return %arg0, %c0_i32, %c0_i32_0 : i32, i32, i32
  }
  func.func @transform_4(%arg0: i32, %arg1: i32) -> (i32, i32) {
    %c0_i32 = arith.constant 0 : i32
    return %arg0, %arg1 : i32, i32
  }
}

module attributes {stable_mosaic.version = 11 : i64} {
  func.func @_add_ln_kernel(%arg0: i32, %arg1: memref<32x128xbf16, #tpu.memory_space<vmem>>, %arg2: memref<32x128xbf16, #tpu.memory_space<vmem>>, %arg3: memref<1x128xf32, #tpu.memory_space<vmem>>, %arg4: memref<1x128xf32, #tpu.memory_space<vmem>>, %arg5: memref<32x128xbf16, #tpu.memory_space<vmem>>) attributes {dimension_semantics = [#tpu.dimension_semantics<parallel>], iteration_bounds = array<i64: 1>, scalar_prefetch = 0 : i64, scratch_operands = 0 : i64, tpu.core_type = #tpu.core_type<tc>, window_params = [{transform_indices = @transform_0, window_bounds = array<i64: 32, 128>}, {transform_indices = @transform_1, window_bounds = array<i64: 32, 128>}, {pipeline_mode = #tpu.pipeline_mode<synchronous>, transform_indices = @transform_2, window_bounds = array<i64: 1, 128>}, {pipeline_mode = #tpu.pipeline_mode<synchronous>, transform_indices = @transform_3, window_bounds = array<i64: 1, 128>}, {transform_indices = @transform_4, window_bounds = array<i64: 32, 128>}]} {
    %c0 = arith.constant 0 : index
    %c0_0 = arith.constant 0 : index
    %0 = vector.load %arg1[%c0, %c0_0] : memref<32x128xbf16, #tpu.memory_space<vmem>>, vector<32x128xbf16>
    %1 = arith.extf %0 : vector<32x128xbf16> to vector<32x128xf32>
    %c0_1 = arith.constant 0 : index
    %c0_2 = arith.constant 0 : index
    %2 = vector.load %arg2[%c0_1, %c0_2] : memref<32x128xbf16, #tpu.memory_space<vmem>>, vector<32x128xbf16>
    %3 = arith.extf %2 : vector<32x128xbf16> to vector<32x128xf32>
    %4 = arith.addf %1, %3 : vector<32x128xf32>
    %cst = arith.constant dense<0.000000e+00> : vector<32xf32>
    %5 = vector.multi_reduction <add>, %4, %cst [1] : vector<32x128xf32> to vector<32xf32>
    %6 = vector.shape_cast %5 : vector<32xf32> to vector<32x1xf32>
    %cst_3 = arith.constant 1.280000e+02 : f32
    %7 = vector.broadcast %cst_3 : f32 to vector<32x1xf32>
    %8 = arith.divf %6, %7 : vector<32x1xf32>
    %9 = vector.broadcast %8 : vector<32x1xf32> to vector<32x128xf32>
    %10 = arith.subf %4, %9 : vector<32x128xf32>
    %11 = arith.mulf %10, %10 : vector<32x128xf32>
    %cst_4 = arith.constant dense<0.000000e+00> : vector<32xf32>
    %12 = vector.multi_reduction <add>, %11, %cst_4 [1] : vector<32x128xf32> to vector<32xf32>
    %13 = vector.shape_cast %12 : vector<32xf32> to vector<32x1xf32>
    %cst_5 = arith.constant 1.280000e+02 : f32
    %14 = vector.broadcast %cst_5 : f32 to vector<32x1xf32>
    %15 = arith.divf %13, %14 : vector<32x1xf32>
    %16 = vector.broadcast %8 : vector<32x1xf32> to vector<32x128xf32>
    %17 = arith.subf %4, %16 : vector<32x128xf32>
    %cst_6 = arith.constant 9.99999996E-13 : f32
    %18 = vector.broadcast %cst_6 : f32 to vector<32x1xf32>
    %19 = arith.addf %15, %18 : vector<32x1xf32>
    %20 = math.rsqrt %19 : vector<32x1xf32>
    %21 = vector.broadcast %20 : vector<32x1xf32> to vector<32x128xf32>
    %22 = arith.mulf %17, %21 : vector<32x128xf32>
    %c0_7 = arith.constant 0 : index
    %c0_8 = arith.constant 0 : index
    %23 = vector.load %arg3[%c0_7, %c0_8] : memref<1x128xf32, #tpu.memory_space<vmem>>, vector<1x128xf32>
    %24 = vector.broadcast %23 : vector<1x128xf32> to vector<32x128xf32>
    %25 = arith.mulf %22, %24 : vector<32x128xf32>
    %c0_9 = arith.constant 0 : index
    %c0_10 = arith.constant 0 : index
    %26 = vector.load %arg4[%c0_9, %c0_10] : memref<1x128xf32, #tpu.memory_space<vmem>>, vector<1x128xf32>
    %27 = vector.broadcast %26 : vector<1x128xf32> to vector<32x128xf32>
    %28 = arith.addf %25, %27 : vector<32x128xf32>
    %29 = arith.truncf %28 : vector<32x128xf32> to vector<32x128xbf16>
    %c0_11 = arith.constant 0 : index
    %c0_12 = arith.constant 0 : index
    %30 = vector.load %arg5[%c0_11, %c0_12] : memref<32x128xbf16, #tpu.memory_space<vmem>>, vector<32x128xbf16>
    tpu.vector_store %arg5[%c0_11, %c0_12], %29 {strides = array<i32>} : memref<32x128xbf16, #tpu.memory_space<vmem>>, vector<32x128xbf16>,
    return
  }
  func.func @transform_0(%arg0: i32) -> (i32, i32) {
    %c0_i32 = arith.constant 0 : i32
    %c0_i32_0 = arith.constant 0 : i32
    return %arg0, %c0_i32 : i32, i32
  }
  func.func @transform_1(%arg0: i32) -> (i32, i32) {
    %c0_i32 = arith.constant 0 : i32
    %c0_i32_0 = arith.constant 0 : i32
    return %arg0, %c0_i32 : i32, i32
  }
  func.func @transform_2(%arg0: i32) -> (i32, i32) {
    %c0_i32 = arith.constant 0 : i32
    %c0_i32_0 = arith.constant 0 : i32
    %c0_i32_1 = arith.constant 0 : i32
    return %c0_i32, %c0_i32_0 : i32, i32
  }
  func.func @transform_3(%arg0: i32) -> (i32, i32) {
    %c0_i32 = arith.constant 0 : i32
    %c0_i32_0 = arith.constant 0 : i32
    %c0_i32_1 = arith.constant 0 : i32
    return %c0_i32, %c0_i32_0 : i32, i32
  }
  func.func @transform_4(%arg0: i32) -> (i32, i32) {
    %c0_i32 = arith.constant 0 : i32
    %c0_i32_0 = arith.constant 0 : i32
    return %arg0, %c0_i32 : i32, i32
  }
}

module attributes {stable_mosaic.version = 11 : i64} {
  func.func @_ffn_kernel(%arg0: i32, %arg1: memref<32x128xbf16, #tpu.memory_space<vmem>>, %arg2: memref<128x256xbf16, #tpu.memory_space<vmem>>, %arg3: memref<1x256xf32, #tpu.memory_space<vmem>>, %arg4: memref<256x128xbf16, #tpu.memory_space<vmem>>, %arg5: memref<1x128xf32, #tpu.memory_space<vmem>>, %arg6: memref<32x128xbf16, #tpu.memory_space<vmem>>) attributes {dimension_semantics = [#tpu.dimension_semantics<parallel>], iteration_bounds = array<i64: 1>, scalar_prefetch = 0 : i64, scratch_operands = 0 : i64, tpu.core_type = #tpu.core_type<tc>, window_params = [{transform_indices = @transform_0, window_bounds = array<i64: 32, 128>}, {pipeline_mode = #tpu.pipeline_mode<synchronous>, transform_indices = @transform_1, window_bounds = array<i64: 128, 256>}, {pipeline_mode = #tpu.pipeline_mode<synchronous>, transform_indices = @transform_2, window_bounds = array<i64: 1, 256>}, {pipeline_mode = #tpu.pipeline_mode<synchronous>, transform_indices = @transform_3, window_bounds = array<i64: 256, 128>}, {pipeline_mode = #tpu.pipeline_mode<synchronous>, transform_indices = @transform_4, window_bounds = array<i64: 1, 128>}, {transform_indices = @transform_5, window_bounds = array<i64: 32, 128>}]} {
    %c0 = arith.constant 0 : index
    %c0_0 = arith.constant 0 : index
    %0 = vector.load %arg1[%c0, %c0_0] : memref<32x128xbf16, #tpu.memory_space<vmem>>, vector<32x128xbf16>
    %c0_1 = arith.constant 0 : index
    %c0_2 = arith.constant 0 : index
    %1 = vector.load %arg2[%c0_1, %c0_2] : memref<128x256xbf16, #tpu.memory_space<vmem>>, vector<128x256xbf16>
    %cst = arith.constant dense<0.000000e+00> : vector<32x256xf32>
    %2 = tpu.matmul %0, %1, %cst {dimension_numbers = #tpu.dot_dimension_numbers<[1], [0], [0], [1], [0, 0, 1, 1], [], []>} : vector<32x128xbf16>, vector<128x256xbf16>, vector<32x256xf32> -> vector<32x256xf32>
    %c0_3 = arith.constant 0 : index
    %c0_4 = arith.constant 0 : index
    %3 = vector.load %arg3[%c0_3, %c0_4] : memref<1x256xf32, #tpu.memory_space<vmem>>, vector<1x256xf32>
    %4 = vector.broadcast %3 : vector<1x256xf32> to vector<32x256xf32>
    %5 = arith.addf %2, %4 : vector<32x256xf32>
    %6 = arith.mulf %5, %5 : vector<32x256xf32>
    %7 = arith.mulf %5, %6 : vector<32x256xf32>
    %cst_5 = arith.constant 4.471500e-02 : f32
    %8 = vector.broadcast %cst_5 : f32 to vector<32x256xf32>
    %9 = arith.mulf %8, %7 : vector<32x256xf32>
    %10 = arith.addf %5, %9 : vector<32x256xf32>
    %cst_6 = arith.constant 0.797884583 : f32
    %11 = vector.broadcast %cst_6 : f32 to vector<32x256xf32>
    %12 = arith.mulf %11, %10 : vector<32x256xf32>
    %13 = math.tanh %12 : vector<32x256xf32>
    %cst_7 = arith.constant 1.000000e+00 : f32
    %14 = vector.broadcast %cst_7 : f32 to vector<32x256xf32>
    %15 = arith.addf %14, %13 : vector<32x256xf32>
    %cst_8 = arith.constant 5.000000e-01 : f32
    %16 = vector.broadcast %cst_8 : f32 to vector<32x256xf32>
    %17 = arith.mulf %16, %15 : vector<32x256xf32>
    %18 = arith.mulf %5, %17 : vector<32x256xf32>
    %19 = arith.truncf %18 : vector<32x256xf32> to vector<32x256xbf16>
    %c0_9 = arith.constant 0 : index
    %c0_10 = arith.constant 0 : index
    %20 = vector.load %arg4[%c0_9, %c0_10] : memref<256x128xbf16, #tpu.memory_space<vmem>>, vector<256x128xbf16>
    %cst_11 = arith.constant dense<0.000000e+00> : vector<32x128xf32>
    %21 = tpu.matmul %19, %20, %cst_11 {dimension_numbers = #tpu.dot_dimension_numbers<[1], [0], [0], [1], [0, 0, 1, 1], [], []>} : vector<32x256xbf16>, vector<256x128xbf16>, vector<32x128xf32> -> vector<32x128xf32>
    %c0_12 = arith.constant 0 : index
    %c0_13 = arith.constant 0 : index
    %22 = vector.load %arg5[%c0_12, %c0_13] : memref<1x128xf32, #tpu.memory_space<vmem>>, vector<1x128xf32>
    %23 = vector.broadcast %22 : vector<1x128xf32> to vector<32x128xf32>
    %24 = arith.addf %21, %23 : vector<32x128xf32>
    %25 = arith.truncf %24 : vector<32x128xf32> to vector<32x128xbf16>
    %c0_14 = arith.constant 0 : index
    %c0_15 = arith.constant 0 : index
    %26 = vector.load %arg6[%c0_14, %c0_15] : memref<32x128xbf16, #tpu.memory_space<vmem>>, vector<32x128xbf16>
    tpu.vector_store %arg6[%c0_14, %c0_15], %25 {strides = array<i32>} : memref<32x128xbf16, #tpu.memory_space<vmem>>, vector<32x128xbf16>,
    return
  }
  func.func @transform_0(%arg0: i32) -> (i32, i32) {
    %c0_i32 = arith.constant 0 : i32
    %c0_i32_0 = arith.constant 0 : i32
    return %arg0, %c0_i32 : i32, i32
  }
  func.func @transform_1(%arg0: i32) -> (i32, i32) {
    %c0_i32 = arith.constant 0 : i32
    %c0_i32_0 = arith.constant 0 : i32
    %c0_i32_1 = arith.constant 0 : i32
    return %c0_i32, %c0_i32_0 : i32, i32
  }
  func.func @transform_2(%arg0: i32) -> (i32, i32) {
    %c0_i32 = arith.constant 0 : i32
    %c0_i32_0 = arith.constant 0 : i32
    %c0_i32_1 = arith.constant 0 : i32
    return %c0_i32, %c0_i32_0 : i32, i32
  }
  func.func @transform_3(%arg0: i32) -> (i32, i32) {
    %c0_i32 = arith.constant 0 : i32
    %c0_i32_0 = arith.constant 0 : i32
    %c0_i32_1 = arith.constant 0 : i32
    return %c0_i32, %c0_i32_0 : i32, i32
  }
  func.func @transform_4(%arg0: i32) -> (i32, i32) {
    %c0_i32 = arith.constant 0 : i32
    %c0_i32_0 = arith.constant 0 : i32
    %c0_i32_1 = arith.constant 0 : i32
    return %c0_i32, %c0_i32_0 : i32, i32
  }
  func.func @transform_5(%arg0: i32) -> (i32, i32) {
    %c0_i32 = arith.constant 0 : i32
    %c0_i32_0 = arith.constant 0 : i32
    return %arg0, %c0_i32 : i32, i32
  }
}

module attributes {stable_mosaic.version = 11 : i64} {
  func.func @_head_kernel(%arg0: i32, %arg1: memref<2x128xbf16, #tpu.memory_space<vmem>>, %arg2: memref<128x128xbf16, #tpu.memory_space<vmem>>, %arg3: memref<1x128xf32, #tpu.memory_space<vmem>>, %arg4: memref<128x128xbf16, #tpu.memory_space<vmem>>, %arg5: memref<1x128xf32, #tpu.memory_space<vmem>>, %arg6: memref<2x128xf32, #tpu.memory_space<vmem>>) attributes {dimension_semantics = [#tpu.dimension_semantics<arbitrary>], iteration_bounds = array<i64: 1>, scalar_prefetch = 0 : i64, scratch_operands = 0 : i64, tpu.core_type = #tpu.core_type<tc>, window_params = [{pipeline_mode = #tpu.pipeline_mode<synchronous>, transform_indices = @transform_0, window_bounds = array<i64: 2, 128>}, {pipeline_mode = #tpu.pipeline_mode<synchronous>, transform_indices = @transform_1, window_bounds = array<i64: 128, 128>}, {pipeline_mode = #tpu.pipeline_mode<synchronous>, transform_indices = @transform_2, window_bounds = array<i64: 1, 128>}, {pipeline_mode = #tpu.pipeline_mode<synchronous>, transform_indices = @transform_3, window_bounds = array<i64: 128, 128>}, {pipeline_mode = #tpu.pipeline_mode<synchronous>, transform_indices = @transform_4, window_bounds = array<i64: 1, 128>}, {pipeline_mode = #tpu.pipeline_mode<synchronous>, transform_indices = @transform_5, window_bounds = array<i64: 2, 128>}]} {
    %c0 = arith.constant 0 : index
    %c0_0 = arith.constant 0 : index
    %0 = vector.load %arg1[%c0, %c0_0] : memref<2x128xbf16, #tpu.memory_space<vmem>>, vector<2x128xbf16>
    %c0_1 = arith.constant 0 : index
    %c0_2 = arith.constant 0 : index
    %1 = vector.load %arg2[%c0_1, %c0_2] : memref<128x128xbf16, #tpu.memory_space<vmem>>, vector<128x128xbf16>
    %cst = arith.constant dense<0.000000e+00> : vector<2x128xf32>
    %2 = tpu.matmul %0, %1, %cst {dimension_numbers = #tpu.dot_dimension_numbers<[1], [0], [0], [1], [0, 0, 1, 1], [], []>} : vector<2x128xbf16>, vector<128x128xbf16>, vector<2x128xf32> -> vector<2x128xf32>
    %c0_3 = arith.constant 0 : index
    %c0_4 = arith.constant 0 : index
    %3 = vector.load %arg3[%c0_3, %c0_4] : memref<1x128xf32, #tpu.memory_space<vmem>>, vector<1x128xf32>
    %4 = vector.broadcast %3 : vector<1x128xf32> to vector<2x128xf32>
    %5 = arith.addf %2, %4 : vector<2x128xf32>
    %6 = math.tanh %5 : vector<2x128xf32>
    %7 = arith.truncf %6 : vector<2x128xf32> to vector<2x128xbf16>
    %c0_5 = arith.constant 0 : index
    %c0_6 = arith.constant 0 : index
    %8 = vector.load %arg4[%c0_5, %c0_6] : memref<128x128xbf16, #tpu.memory_space<vmem>>, vector<128x128xbf16>
    %cst_7 = arith.constant dense<0.000000e+00> : vector<2x128xf32>
    %9 = tpu.matmul %7, %8, %cst_7 {dimension_numbers = #tpu.dot_dimension_numbers<[1], [0], [0], [1], [0, 0, 1, 1], [], []>} : vector<2x128xbf16>, vector<128x128xbf16>, vector<2x128xf32> -> vector<2x128xf32>
    %c0_8 = arith.constant 0 : index
    %c0_9 = arith.constant 0 : index
    %10 = vector.load %arg5[%c0_8, %c0_9] : memref<1x128xf32, #tpu.memory_space<vmem>>, vector<1x128xf32>
    %11 = vector.broadcast %10 : vector<1x128xf32> to vector<2x128xf32>
    %12 = arith.addf %9, %11 : vector<2x128xf32>
    %c0_10 = arith.constant 0 : index
    %c0_11 = arith.constant 0 : index
    %13 = vector.load %arg6[%c0_10, %c0_11] : memref<2x128xf32, #tpu.memory_space<vmem>>, vector<2x128xf32>
    tpu.vector_store %arg6[%c0_10, %c0_11], %12 {strides = array<i32>} : memref<2x128xf32, #tpu.memory_space<vmem>>, vector<2x128xf32>,
    return
  }
  func.func @transform_0(%arg0: i32) -> (i32, i32) {
    %c0_i32 = arith.constant 0 : i32
    %c0_i32_0 = arith.constant 0 : i32
    %c0_i32_1 = arith.constant 0 : i32
    return %c0_i32, %c0_i32_0 : i32, i32
  }
  func.func @transform_1(%arg0: i32) -> (i32, i32) {
    %c0_i32 = arith.constant 0 : i32
    %c0_i32_0 = arith.constant 0 : i32
    %c0_i32_1 = arith.constant 0 : i32
    return %c0_i32, %c0_i32_0 : i32, i32
  }
  func.func @transform_2(%arg0: i32) -> (i32, i32) {
    %c0_i32 = arith.constant 0 : i32
    %c0_i32_0 = arith.constant 0 : i32
    %c0_i32_1 = arith.constant 0 : i32
    return %c0_i32, %c0_i32_0 : i32, i32
  }
  func.func @transform_3(%arg0: i32) -> (i32, i32) {
    %c0_i32 = arith.constant 0 : i32
    %c0_i32_0 = arith.constant 0 : i32
    %c0_i32_1 = arith.constant 0 : i32
    return %c0_i32, %c0_i32_0 : i32, i32
  }
  func.func @transform_4(%arg0: i32) -> (i32, i32) {
    %c0_i32 = arith.constant 0 : i32
    %c0_i32_0 = arith.constant 0 : i32
    %c0_i32_1 = arith.constant 0 : i32
    return %c0_i32, %c0_i32_0 : i32, i32
  }
  func.func @transform_5(%arg0: i32) -> (i32, i32) {
    %c0_i32 = arith.constant 0 : i32
    %c0_i32_0 = arith.constant 0 : i32
    %c0_i32_1 = arith.constant 0 : i32
    return %c0_i32, %c0_i32_0 : i32, i32
  }
}

</mosaic_0001>

<bundles_post_ra>
// kernel: bert_classifier_forward.14
= control target key start
LH: loop header
LB: loop body
LE: loop exit
PB: predicated region body
PF: predicated region fallthrough
CT: control target
= control target key end

     0   :  { %s182_s0 = inlined_call_operand.vmem [shape: f32[32,128], index: 0, kind: input, shape index: {}]   ;;  %s183_s1 = inlined_call_operand.vmem [shape: f32[1,128], index: 1, kind: input, shape index: {}]   ;;  %s184_s2 = inlined_call_operand.vmem [shape: f32[1,128], index: 2, kind: input, shape index: {}]   ;;  %s185_s3 = inlined_call_operand.vmem [shape: bf16[32,128], index: 3, kind: output, shape index: {}]  }
   0x1   :  { %v14_v0 = vld [vmem:[%s182_s0] sm:$0xff]  ;;  %v16_v1 = vld [vmem:[%s182_s0 + $0x10] sm:$0xff]  ;;  %v15_v2 = vld [vmem:[%s182_s0 + $0x8] sm:$0xff] }
   0x2   :  { %18 = vadd.xlane.f32.xlu0 %v14_v0  ;;  %22 = vadd.xlane.f32.xlu1 %v16_v1  ;;  %v17_v3 = vld [vmem:[%s182_s0 + $0x18] sm:$0xff]  ;;  %v109_v34 = vld [vmem:[%s183_s1] ss:$0 sm:$0xff] }
   0x3   :  { %v110_v39 = vld [vmem:[%s184_s2] ss:$0 sm:$0xff] }
   0x6   :  { %20 = vadd.xlane.f32.xlu0 %v15_v2  ;;  %24 = vadd.xlane.f32.xlu1 %v17_v3 }
  0x8b   :  { %v19_v4 = vpop.xlane.xlu0 %18  ;;  %v23_v5 = vpop.xlane.xlu1 %22 }
  0x8c   :  { %v27_v6 = vmul.f32 0.0078125, %v19_v4  ;;  %v29_v7 = vmul.f32 0.0078125, %v23_v5 }
  0x8e   :  { %v31_v8 = vsub.f32 %v14_v0, %v27_v6  ;;  %v33_v9 = vsub.f32 %v16_v1, %v29_v7 }
  0x8f   :  { %v21_v10 = vpop.xlane.xlu0 %20  ;;  %v25_v11 = vpop.xlane.xlu1 %24 }
  0x90   :  { %v28_v12 = vmul.f32 0.0078125, %v21_v10  ;;  %v35_v13 = vmul.f32 %v31_v8, %v31_v8  ;;  %v30_v14 = vmul.f32 0.0078125, %v25_v11  ;;  %v37_v17 = vmul.f32 %v33_v9, %v33_v9 }
  0x92   :  { %v32_v15 = vsub.f32 %v15_v2, %v28_v12  ;;  %39 = vadd.xlane.f32.xlu0 %v35_v13  ;;  %v34_v16 = vsub.f32 %v17_v3, %v30_v14 }
  0x94   :  { %v36_v18 = vmul.f32 %v32_v15, %v32_v15  ;;  %v38_v19 = vmul.f32 %v34_v16, %v34_v16 }
  0x96   :  { %43 = vadd.xlane.f32.xlu0 %v37_v17  ;;  %41 = vadd.xlane.f32.xlu1 %v36_v18 }
  0x9a   :  { %45 = vadd.xlane.f32.xlu1 %v38_v19 }
 0x11b   :  { %v40_v20 = vpop.xlane.xlu0 %39 }
 0x11c   :  { %v47_v21 = vmul.f32 0.0078125, %v40_v20 }
 0x11e   :  { %v51_v22 = vadd.f32 1e-12, %v47_v21 }
 0x11f   :  { %v42_v23 = vpop.xlane.xlu1 %41  ;;  %v44_v24 = vpop.xlane.xlu0 %43 }
 0x120   :  { %130 = vrsqrt.f32 %v51_v22  ;;  %v48_v25 = vmul.f32 0.0078125, %v42_v23  ;;  %v49_v26 = vmul.f32 0.0078125, %v44_v24 }
 0x122   :  { %v52_v27 = vadd.f32 1e-12, %v48_v25  ;;  %v53_v28 = vadd.f32 1e-12, %v49_v26 }
 0x123   :  { %v46_v29 = vpop.xlane.xlu1 %45 }
 0x124   :  { %132 = vrsqrt.f32 %v52_v27  ;;  %v50_v30 = vmul.f32 0.0078125, %v46_v29 }
 0x125   :  { %134 = vrsqrt.f32 %v53_v28 }
 0x126   :  { %v54_v31 = vadd.f32 1e-12, %v50_v30 }
 0x128   :  { %136 = vrsqrt.f32 %v54_v31 }
 0x12d   :  { %v131_v32 = vpop.eup %130 }
 0x12e   :  { %v59_v33 = vmul.f32 %v131_v32, %v31_v8 }
 0x130   :  { %v70_v37 = vmul.f32 %v109_v34, %v59_v33 }
 0x131   :  { %v133_v35 = vpop.eup %132 }
 0x132   :  { %v135_v36 = vpop.eup %134  ;;  %v60_v38 = vmul.f32 %v133_v35, %v32_v15  ;;  %v81_v43 = vadd.f32 %v110_v39, %v70_v37 }
 0x133   :  { %v61_v40 = vmul.f32 %v135_v36, %v33_v9 }
 0x134   :  { %v71_v41 = vmul.f32 %v109_v34, %v60_v38 }
 0x135   :  { %v137_v42 = vpop.eup %136  ;;  %v72_v45 = vmul.f32 %v109_v34, %v61_v40 }
 0x136   :  { %v82_v44 = vadd.f32 %v110_v39, %v71_v41  ;;  %v62_v46 = vmul.f32 %v137_v42, %v34_v16 }
 0x137   :  { %v83_v49 = vadd.f32 %v110_v39, %v72_v45 }
 0x138   :  { %v122_v47 = vpack.c.bf16 %v82_v44, %v81_v43  ;;  %v73_v48 = vmul.f32 %v109_v34, %v62_v46 }
 0x13a   :  { %123 = vst [vmem:[%s185_s3] sm:$0xff] %v122_v47   ;;  %v84_v50 = vadd.f32 %v110_v39, %v73_v48 }
 0x13c   :  { %v127_v51 = vpack.c.bf16 %v84_v50, %v83_v49 }
 0x13e   :  { %129 = vst [vmem:[%s185_s3 + $0x8] sm:$0xff] %v127_v51  }

// kernel: bert_classifier_forward.17
= control target key start
LH: loop header
LB: loop body
LE: loop exit
PB: predicated region body
PF: predicated region fallthrough
CT: control target
= control target key end

     0   :  { %s335_s1 = inlined_call_operand.vmem [shape: bf16[128,128], index: 1, kind: input, shape index: {}]   ;;  %s336_s0 = inlined_call_operand.vmem [shape: bf16[32,128], index: 0, kind: input, shape index: {}]   ;;  %s337_s2 = inlined_call_operand.vmem [shape: f32[1,128], index: 2, kind: input, shape index: {}]   ;;  %s338_s3 = inlined_call_operand.vmem [shape: bf16[32,128], index: 3, kind: output, shape index: {}]  }
   0x1   :  { %v266_v0 = vld [vmem:[%s335_s1 + $0x38] sm:$0xff]   ;;  %v267_v1 = vld [vmem:[%s335_s1 + $0x30] sm:$0xff]   ;;  %v268_v2 = vld [vmem:[%s335_s1 + $0x28] sm:$0xff]  }
   0x2   :  { %246 = vmatprep.subr.bf16.mxu0 %v266_v0  ;;  %v269_v3 = vld [vmem:[%s335_s1 + $0x20] sm:$0xff]   ;;  %v270_v5 = vld [vmem:[%s335_s1 + $0x18] sm:$0xff]   ;;  %v271_v6 = vld [vmem:[%s335_s1 + $0x10] sm:$0xff]  }
   0x3   :  { %247 = vmatpush3.bf16.msra.mxu0 %v266_v0  ;;  %v274_v4 = vld [vmem:[%s336_s0] sm:$0xff]   ;;  %v272_v7 = vld [vmem:[%s335_s1 + $0x8] sm:$0xff]  }
   0x4   :  { %248 = vmatprep.subr.bf16.mxu0 %v267_v1  ;;  %262 = vmatprep.mubr.bf16.mxu0 %v274_v4  ;;  %v273_v8 = vld [vmem:[%s335_s1] sm:$0xff]   ;;  %v275_v9 = vld [vmem:[%s336_s0 + $0x8] sm:$0xff]  }
   0x5   :  { %v216_v11 = vld [vmem:[%s337_s2] ss:$0 sm:$0xff] }
   0x7   :  { %249 = vmatpush3.bf16.msra.mxu0 %v267_v1 }
   0x8   :  { %250 = vmatprep.subr.bf16.mxu0 %v268_v2 }
   0xb   :  { %251 = vmatpush3.bf16.msra.mxu0 %v268_v2 }
   0xc   :  { %252 = vmatprep.subr.bf16.mxu0 %v269_v3 }
   0xf   :  { %253 = vmatpush3.bf16.msra.mxu0 %v269_v3 }
  0x10   :  { %254 = vmatprep.subr.bf16.mxu0 %v270_v5 }
  0x13   :  { %255 = vmatpush3.bf16.msra.mxu0 %v270_v5 }
  0x14   :  { %256 = vmatprep.subr.bf16.mxu0 %v271_v6 }
  0x17   :  { %257 = vmatpush3.bf16.msra.mxu0 %v271_v6 }
  0x18   :  { %258 = vmatprep.subr.bf16.mxu0 %v272_v7 }
  0x1b   :  { %259 = vmatpush3.bf16.msra.mxu0 %v272_v7 }
  0x1c   :  { %260 = vmatprep.subr.bf16.mxu0 %v273_v8 }
  0x1f   :  { %261 = vmatpush3.bf16.msra.mxu0 %v273_v8 }
  0x22   :  { %263 = vmatmul.mubr.bf16.vlgmr.msra.gmra.mxu0 %v275_v9 }
  0xe2   :  { %v264_v10 = vpop.f32.mrf.mxu0 }
  0xe3   :  { %v180_v14 = vadd.f32 %v264_v10, %v216_v11 }
  0xe4   :  { %v141_v12 = vpop.f32.mrf.mxu0 }
  0xe5   :  { %v178_v17 = vadd.f32 %v216_v11, %v141_v12 }
  0xe6   :  { %v265_v13 = vpop.f32.mrf.mxu0 }
  0xe7   :  { %v181_v15 = vadd.f32 %v265_v13, %v216_v11 }
  0xe8   :  { %v144_v16 = vpop.f32.mrf.mxu0 }
  0xe9   :  { %v233_v18 = vpack.c.bf16 %v181_v15, %v180_v14  ;;  %v179_v19 = vadd.f32 %v216_v11, %v144_v16 }
  0xeb   :  { %235 = vst [vmem:[%s338_s3 + $0x8] sm:$0xff] %v233_v18   ;;  %v228_v20 = vpack.c.bf16 %v179_v19, %v178_v17 }
  0xed   :  { %229 = vst [vmem:[%s338_s3] sm:$0xff] %v228_v20  }

// kernel: bert_classifier_forward.15
= control target key start
LH: loop header
LB: loop body
LE: loop exit
PB: predicated region body
PF: predicated region fallthrough
CT: control target
= control target key end

     0   :  { %s879_s12 = smov 0   ;;  %s881_s13 = smov 0   ;;  %s984_s0 = inlined_call_operand.vmem [shape: bf16[32,128], index: 0, kind: input, shape index: {}]   ;;  %s985_s1 = inlined_call_operand.vmem [shape: bf16[128,384], index: 1, kind: input, shape index: {}]   ;;  %s986_s2 = inlined_call_operand.vmem [shape: f32[1,384], index: 2, kind: input, shape index: {}]   ;;  %s987_s3 = inlined_call_operand.vmem [shape: bf16[32,384], index: 3, kind: output, shape index: {}]  }
   0x1   :  { %s883_s14 = smov 0   ;;  %s885_s15 = smov 0  }
   0x2   :  { %s887_s16 = smov 0  }
   0x3 LB: > { %s28_s17 = sadd.s32 1, %s853_s15  ;;  %s695_s18 = sadd.s32 4294967295, %s857_s16   ;;  %s857_s16 = sphi %s887_s16, %s13_s16   ;;  %s853_s15 = sphi %s885_s15, %s992_s15   ;;  %s849_s14 = sphi %s883_s14, %s991_s14   ;;  %s845_s13 = sphi %s881_s13, %s990_s13   ;;  %s841_s12 = sphi %s879_s12, %s989_s12  }
   0x4   : > { %p30_p0 = scmp.ge.s32.totalorder %s28_s17, 3  ;;  %p76_p1 = scmp.ne.s32.totalorder %s845_s13, %s841_s12 }
   0x5   : > { %p77_p2 = scmp.eq.s32.totalorder %s857_s16, 0  ;;  %p134_p4 = scmp.eq.s32.totalorder %s695_s18, 2 }
   0x6   : > { %s994_s17 = smov (%p30_p0, %s28_s17), 0  ;;  %s69_s20 = sadd.s32 1, %s845_s13 }
   0x7   : > { %p78_p3 = por %p77_p2, %p76_p1  ;;  %s65_s19 = ssub.s32 %s853_s15, %s994_s17 }
   0x8   : > { %p67_p5 = scmp.eq.s32.totalorder %s65_s19, 0  ;;  %p914_p6 = por %p134_p4, %p76_p1 }
   0x9   : > { %p699_p7 = scmp.ge.s32.totalorder %s857_s16, 3 }
   0xa   : > { %s919_s22 = scalar_select %p67_p5, %s845_s13, %s69_s20  }
   0xb   : > { %168 = sbr.rel (%p699_p7) target bundleno = 30 (0x1e), region = 20 }
  0x10   : > { %171 = sbr.rel (!%p78_p3) target bundleno = 30 (0x1e), region = 24  ;;  %s173_s23 = sand.u32 (%p78_p3), 1, %s845_s13  }
  0x11   : > { %s701_s24 = sshll.u32 (%p78_p3), %s853_s15, 2  ;;  %s700_s25 = sshll.u32 (%p78_p3), %s173_s23, 6 }
  0x12   : > { %s927_s28 = scalar_lea.vmem (%p78_p3), %s985_s1, %s701_s24  ;;  %s175_s29 = scalar_lea.vmem (%p78_p3), [#allocation3], %s700_s25 }
  0x13   : > { %v197_v0 = vld [vmem:[%s927_s28] sm:$0xf] (%p78_p3)  ;;  %v199_v1 = vld [vmem:[%s927_s28 + $0xc] sm:$0xf] (%p78_p3)  ;;  %v201_v2 = vld [vmem:[%s927_s28 + $0x18] sm:$0xf] (%p78_p3) }
  0x14   : > { %198 = vst [vmem:[%s175_s29] sm:$0xf] (%p78_p3), %v197_v0  ;;  %200 = vst [vmem:[%s175_s29 + $0x4] sm:$0xf] (%p78_p3), %v199_v1  ;;  %v203_v3 = vld [vmem:[%s927_s28 + $0x24] sm:$0xf] (%p78_p3) }
  0x15   : > { %v205_v4 = vld [vmem:[%s927_s28 + $0x30] sm:$0xf]  ;;  %202 = vst [vmem:[%s175_s29 + $0x8] sm:$0xf] %v201_v2  ;;  %204 = vst [vmem:[%s175_s29 + $0xc] sm:$0xf] %v203_v3 }
  0x16   : > { %206 = vst [vmem:[%s175_s29 + $0x10] sm:$0xf] %v205_v4  ;;  %v207_v5 = vld [vmem:[%s927_s28 + $0x3c] sm:$0xf]  ;;  %v209_v6 = vld [vmem:[%s927_s28 + $0x48] sm:$0xf] }
  0x17   : > { %v211_v7 = vld [vmem:[%s927_s28 + $0x54] sm:$0xf]  ;;  %208 = vst [vmem:[%s175_s29 + $0x14] sm:$0xf] %v207_v5  ;;  %210 = vst [vmem:[%s175_s29 + $0x18] sm:$0xf] %v209_v6 }
  0x18   : > { %212 = vst [vmem:[%s175_s29 + $0x1c] sm:$0xf] %v211_v7  ;;  %v213_v8 = vld [vmem:[%s927_s28 + $0x60] sm:$0xf]  ;;  %v215_v9 = vld [vmem:[%s927_s28 + $0x6c] sm:$0xf] }
  0x19   : > { %v217_v10 = vld [vmem:[%s927_s28 + $0x78] sm:$0xf]  ;;  %214 = vst [vmem:[%s175_s29 + $0x20] sm:$0xf] %v213_v8  ;;  %216 = vst [vmem:[%s175_s29 + $0x24] sm:$0xf] %v215_v9 }
  0x1a   : > { %218 = vst [vmem:[%s175_s29 + $0x28] sm:$0xf] %v217_v10  ;;  %v219_v11 = vld [vmem:[%s927_s28 + $0x84] sm:$0xf]  ;;  %v221_v12 = vld [vmem:[%s927_s28 + $0x90] sm:$0xf] }
  0x1b   : > { %v223_v13 = vld [vmem:[%s927_s28 + $0x9c] sm:$0xf]  ;;  %220 = vst [vmem:[%s175_s29 + $0x2c] sm:$0xf] %v219_v11  ;;  %222 = vst [vmem:[%s175_s29 + $0x30] sm:$0xf] %v221_v12 }
  0x1c   : > { %224 = vst [vmem:[%s175_s29 + $0x34] sm:$0xf] %v223_v13  ;;  %v225_v14 = vld [vmem:[%s927_s28 + $0xa8] sm:$0xf]  ;;  %v227_v15 = vld [vmem:[%s927_s28 + $0xb4] sm:$0xf] }
  0x1d   : > { %226 = vst [vmem:[%s175_s29 + $0x38] sm:$0xf] %v225_v14  ;;  %228 = vst [vmem:[%s175_s29 + $0x3c] sm:$0xf] %v227_v15 }
  0x1e PF: > { %p702_p8 = scmp.ge.s32.totalorder %s857_s16, 1  ;;  %p289_p9 = scmp.lt.s32.totalorder %s857_s16, 4 }
  0x20   : > { %p290_p10 = pnand %p702_p8, %p289_p9 }
  0x21   : > { %s296_s30 = sand.u32 (!%p290_p10), 1, %s841_s12   ;;  %p339_p11 = scmp.lt.s32.totalorder (!%p290_p10), %s849_s14, 2 }
  0x22   : > { %293 = sbr.rel (%p290_p10) target bundleno = 284 (0x11c), region = 69  ;;  %s703_s6 = sshll.u32 (!%p290_p10), %s296_s30, 6 }
  0x23   : > { %s298_s7 = scalar_lea.vmem (!%p290_p10), [#allocation3], %s703_s6  ;;  %s704_s20 = sshll.u32 (!%p290_p10), %s296_s30, 4 }
  0x24   : > { %s328_s23 = scalar_lea.vmem (!%p290_p10), [#allocation4], %s704_s20 }
  0x27   : > { %v817_v16 = vld [vmem:[%s984_s0] sm:$0xff]   ;;  %v809_v17 = vld [vmem:[%s298_s7 + $0x38] sm:$0xff]   ;;  %v810_v18 = vld [vmem:[%s298_s7 + $0x30] sm:$0xff]   ;;  %s340_s10 = scalar_select %p339_p11, %s849_s14, 2 }
  0x28   : > { %765 = vmatprep.mubr.bf16.mxu0 %v817_v16  ;;  %749 = vmatprep.subr.bf16.mxu0 %v809_v17  ;;  %v811_v19 = vld [vmem:[%s298_s7 + $0x28] sm:$0xff]   ;;  %v812_v20 = vld [vmem:[%s298_s7 + $0x20] sm:$0xff]   ;;  %v813_v21 = vld [vmem:[%s298_s7 + $0x18] sm:$0xff]   ;;  %s721_s24 = sshll.u32 (%p914_p6), %s849_s14, 2 }
  0x29   : > { %750 = vmatpush3.bf16.msra.mxu0 %v809_v17  ;;  %v814_v22 = vld [vmem:[%s298_s7 + $0x10] sm:$0xff]   ;;  %v815_v23 = vld [vmem:[%s298_s7 + $0x8] sm:$0xff]   ;;  %v816_v24 = vld [vmem:[%s298_s7] sm:$0xff]   ;;  %s341_s19 = scalar_lea.vmem %s986_s2, %s340_s10  ;;  %s542_s26 = scalar_lea.vmem (%p914_p6), %s987_s3, %s721_s24 }
  0x2a   : > { %751 = vmatprep.subr.bf16.mxu0 %v810_v18  ;;  %v818_v25 = vld [vmem:[%s984_s0 + $0x8] sm:$0xff]   ;;  %v715_v27 = vld [vmem:[%s341_s19] ss:$0 sm:$0xff] }
  0x2d   : > { %752 = vmatpush3.bf16.msra.mxu0 %v810_v18 }
  0x2e   : > { %753 = vmatprep.subr.bf16.mxu0 %v811_v19 }
  0x31   : > { %754 = vmatpush3.bf16.msra.mxu0 %v811_v19 }
  0x32   : > { %755 = vmatprep.subr.bf16.mxu0 %v812_v20 }
  0x35   : > { %756 = vmatpush3.bf16.msra.mxu0 %v812_v20 }
  0x36   : > { %757 = vmatprep.subr.bf16.mxu0 %v813_v21 }
  0x39   : > { %758 = vmatpush3.bf16.msra.mxu0 %v813_v21 }
  0x3a   : > { %759 = vmatprep.subr.bf16.mxu0 %v814_v22 }
  0x3d   : > { %760 = vmatpush3.bf16.msra.mxu0 %v814_v22 }
  0x3e   : > { %761 = vmatprep.subr.bf16.mxu0 %v815_v23 }
  0x41   : > { %762 = vmatpush3.bf16.msra.mxu0 %v815_v23 }
  0x42   : > { %763 = vmatprep.subr.bf16.mxu0 %v816_v24 }
  0x45   : > { %764 = vmatpush3.bf16.msra.mxu0 %v816_v24 }
  0x48   : > { %766 = vmatmul.mubr.bf16.vlgmr.msra.gmra.mxu0 %v818_v25 }
 0x108   : > { %v767_v26 = vpop.f32.mrf.mxu0 }
 0x109   : > { %v509_v30 = vadd.f32 %v767_v26, %v715_v27 }
 0x10a   : > { %v470_v28 = vpop.f32.mrf.mxu0 }
 0x10b   : > { %v507_v33 = vadd.f32 %v715_v27, %v470_v28 }
 0x10c   : > { %v768_v29 = vpop.f32.mrf.mxu0 }
 0x10d   : > { %v510_v31 = vadd.f32 %v768_v29, %v715_v27 }
 0x10e   : > { %v473_v32 = vpop.f32.mrf.mxu0 }
 0x10f   : > { %v736_v34 = vpack.c.bf16 %v510_v31, %v509_v30  ;;  %v508_v35 = vadd.f32 %v715_v27, %v473_v32  ;;  %537 = sbr.rel (!%p914_p6) target bundleno = 284 (0x11c), region = 85 }
 0x111   : > { %738 = vst [vmem:[%s328_s23 + $0x8] sm:$0xff] %v736_v34   ;;  %v731_v36 = vpack.c.bf16 %v508_v35, %v507_v33 }
 0x113   : > { %732 = vst [vmem:[%s328_s23] sm:$0xff] %v731_v36  }
 0x118   : > { %v563_v39 = vld [vmem:[%s328_s23 + $0x8] sm:$0xf]  ;;  %v565_v40 = vld [vmem:[%s328_s23 + $0xc] sm:$0xf] }
 0x119   : > { %564 = vst [vmem:[%s542_s26 + $0x18] sm:$0xf] %v563_v39  ;;  %566 = vst [vmem:[%s542_s26 + $0x24] sm:$0xf] %v565_v40 }
 0x11a   : > { %v559_v37 = vld [vmem:[%s328_s23] sm:$0xf]  ;;  %v561_v38 = vld [vmem:[%s328_s23 + $0x4] sm:$0xf] }
 0x11b   : > { %560 = vst [vmem:[%s542_s26] sm:$0xf] %v559_v37  ;;  %562 = vst [vmem:[%s542_s26 + $0xc] sm:$0xf] %v561_v38 }
 0x11c PF: > { %s13_s16 = sadd.s32 1, %s857_s16   ;;  %s989_s12 = smov %s845_s13 }
 0x11d   : > { %p10_p12 = scmp.ge.s32.totalorder %s13_s16, 5   ;;  %s990_s13 = smov %s919_s22 }
 0x11e   : > { %s991_s14 = smov %s853_s15  ;;  %s992_s15 = smov %s994_s17 }
 0x11f   :  { %12 = sbr.rel (!%p10_p12) target bundleno = 3 (0x3), region = 163 }

// kernel: bert_classifier_forward.16
= control target key start
LH: loop header
LB: loop body
LE: loop exit
PB: predicated region body
PF: predicated region fallthrough
CT: control target
= control target key end

     0   :  { %s1072_s15 = smov 0   ;;  %s1074_s16 = smov 0   ;;  %s1199_s0 = inlined_call_operand.vmem [shape: bf16[32,384], index: 0, kind: input, shape index: {}, may-alias: {0,1,2}]   ;;  %s1200_s1 = inlined_call_operand.vmem [shape: bf16[32,384], index: 1, kind: input, shape index: {}, may-alias: {0,1,2}]   ;;  %s1201_s2 = inlined_call_operand.vmem [shape: bf16[32,384], index: 2, kind: input, shape index: {}, may-alias: {0,1,2}]   ;;  %s1202_s3 = inlined_call_operand.vmem [shape: f32[2,1,16], index: 3, kind: input, shape index: {}]   ;;  %s1203_s4 = inlined_call_operand.vmem [shape: bf16[32,128], index: 4, kind: output, shape index: {}]  }
   0x1   :  { %s1076_s17 = smov 0   ;;  %s1078_s18 = smov 0  }
   0x2   :  { %s1080_s19 = smov 0  }
   0x3 LB: > { %s26_s20 = sadd.s32 1, %s1038_s18  ;;  %p42_p1 = scmp.ne.s32.totalorder %s1030_s16, %s1026_s15  ;;  %s1042_s19 = sphi %s1080_s19, %s14_s19   ;;  %s1038_s18 = sphi %s1078_s18, %s1208_s18   ;;  %s1034_s17 = sphi %s1076_s17, %s1207_s17   ;;  %s1030_s16 = sphi %s1074_s16, %s1206_s16   ;;  %s1026_s15 = sphi %s1072_s15, %s1205_s15  }
   0x4   : > { %p28_p0 = scmp.ge.s32.totalorder %s26_s20, 2  ;;  %p43_p2 = scmp.eq.s32.totalorder %s1042_s19, 0 }
   0x5   : > { %s35_s23 = sadd.s32 1, %s1030_s16  ;;  %p867_p5 = scmp.ge.s32.totalorder %s1042_s19, 2 }
   0x6   : > { %s1210_s20 = smov (%p28_p0, %s26_s20), 0  ;;  %p1103_p3 = por %p43_p2, %p42_p1 }
   0x7   : > { %s30_s22 = ssub.s32 %s1038_s18, %s1210_s20  ;;  %182 = sbr.rel (%p867_p5) target bundleno = 30 (0x1e), region = 16 }
   0x8   : > { %p33_p4 = scmp.eq.s32.totalorder %s30_s22, 0 }
   0xa   : > { %s1111_s24 = scalar_select %p33_p4, %s1030_s16, %s35_s23  }
   0xc   : > { %185 = sbr.rel (!%p1103_p3) target bundleno = 18 (0x12), region = 20  ;;  %s187_s25 = sand.u32 (%p1103_p3), 1, %s1030_s16  }
   0xd   : > { %s937_s26 = smul.u32 (%p1103_p3), 24, %s1038_s18  ;;  %s868_s27 = sshll.u32 (%p1103_p3), %s187_s25, 3 }
   0xe   : > { %s189_s5 = scalar_lea.vmem (%p1103_p3), [#allocation2], %s868_s27 }
   0xf   : > { %s194_s30 = scalar_lea.vmem (%p1103_p3), %s1199_s0, %s937_s26 }
  0x10   : > { %v211_v0 = vld [vmem:[%s194_s30] sm:$0xf] (%p1103_p3)  ;;  %v213_v1 = vld [vmem:[%s194_s30 + $0xc] sm:$0xf] (%p1103_p3) }
  0x11   : > { %212 = vst [vmem:[%s189_s5] sm:$0xf] %v211_v0  ;;  %214 = vst [vmem:[%s189_s5 + $0x4] sm:$0xf] %v213_v1 }
  0x12 PF: > { %242 = sbr.rel (!%p1103_p3) target bundleno = 24 (0x18), region = 61  ;;  %s244_s6 = sand.u32 (%p1103_p3), 1, %s1030_s16  }
  0x13   : > { %s873_s7 = smul.u32 (%p1103_p3), 24, %s1038_s18  ;;  %s872_s8 = sshll.u32 (%p1103_p3), %s244_s6, 3 }
  0x14   : > { %s246_s12 = scalar_lea.vmem (%p1103_p3), [#allocation3], %s872_s8 }
  0x15   : > { %s769_s11 = scalar_lea.vmem (%p1103_p3), %s1200_s1, %s873_s7 }
  0x16   : > { %v874_v2 = vld [vmem:[%s769_s11 + $0x4] sm:$0xf] (%p1103_p3)  ;;  %v875_v3 = vld [vmem:[%s769_s11 + $0x10] sm:$0xf] (%p1103_p3) }
  0x17   : > { %270 = vst [vmem:[%s246_s12] sm:$0xf] %v874_v2  ;;  %272 = vst [vmem:[%s246_s12 + $0x4] sm:$0xf] %v875_v3 }
  0x18 PF: > { %300 = sbr.rel (!%p1103_p3) target bundleno = 30 (0x1e), region = 102  ;;  %s302_s13 = sand.u32 (%p1103_p3), 1, %s1030_s16  }
  0x19   : > { %s877_s14 = smul.u32 (%p1103_p3), 24, %s1038_s18  ;;  %s876_s22 = sshll.u32 (%p1103_p3), %s302_s13, 3 }
  0x1a   : > { %s304_s27 = scalar_lea.vmem (%p1103_p3), [#allocation4], %s876_s22 }
  0x1b   : > { %s776_s26 = scalar_lea.vmem (%p1103_p3), %s1201_s2, %s877_s14 }
  0x1c   : > { %v878_v4 = vld [vmem:[%s776_s26 + $0x8] sm:$0xf] (%p1103_p3)  ;;  %v879_v5 = vld [vmem:[%s776_s26 + $0x14] sm:$0xf] (%p1103_p3) }
  0x1d   : > { %328 = vst [vmem:[%s304_s27] sm:$0xf] %v878_v4  ;;  %330 = vst [vmem:[%s304_s27 + $0x4] sm:$0xf] %v879_v5 }
  0x1e PF: > { %p880_p6 = scmp.ge.s32.totalorder %s1042_s19, 1  ;;  %p363_p7 = scmp.lt.s32.totalorder %s1042_s19, 3 }
  0x20   : > { %p364_p8 = pnand %p880_p6, %p363_p7 }
  0x21   : > { %s370_s21 = sand.u32 (!%p364_p8), 1, %s1026_s15   ;;  %p428_p9 = scmp.lt.s32.totalorder (!%p364_p8), %s1034_s17, 1 }
  0x22   : > { %367 = sbr.rel (%p364_p8) target bundleno = 1403 (0x57b), region = 147  ;;  %s1139_s28 = sshll.u32 (!%p364_p8), %s370_s21, 3 }
  0x23   : > { %s379_s15 = scalar_lea.vmem (!%p364_p8), [#allocation3], %s1139_s28  ;;  %s372_s29 = scalar_lea.vmem (!%p364_p8), [#allocation2], %s1139_s28 }
  0x24   : > { %s1046_s8 = smov (!%p364_p8), 64   ;;  %s386_s9 = scalar_lea.vmem (!%p364_p8), [#allocation4], %s1139_s28 }
  0x25   : > { %s884_s10 = sshll.u32 (!%p364_p8), %s1034_s17, 1 }
  0x26   : > { %p432_p10 = scmp.lt.s32.totalorder (!%p364_p8), %s884_s10, 3 }
  0x27   : > { %v1044_v6 = vmov 0.0   ;;  %vm1045_vm0 = vmmov 0   ;;  %vm467_vm1 = vcmask 523264   ;;  %v986_v7 = vld [vmem:[%s379_s15] sm:$0xff]   ;;  %v443_v8 = vld [vmem:[%s372_s29] sm:$0xf] }
  0x28   : > { %913 = vmatprep.subr.bf16.mxu0 %v1044_v6  ;;  %915 = vmatprep.mubr.msk.bf16.mxu0 %vm1045_vm0, %v1044_v6  ;;  %v444_v9 = vld [vmem:[%s372_s29 + $0x4] sm:$0xf]  ;;  %v472_v10 = vsel %vm467_vm1, %v986_v7, 0  ;;  %v445_v11 = vmul.bf16 1040203264, %v443_v8  ;;  %s429_s30 = scalar_select %p428_p9, %s1034_s17, 1 }
  0x29   : > { %919 = vmatprep.subr.bf16.mxu1 %v1044_v6  ;;  %921 = vmatprep.mubr.msk.bf16.mxu1 %vm1045_vm0, %v1044_v6  ;;  %v446_v12 = vmul.bf16 1040203264, %v444_v9  ;;  %vm515_vm2 = vcmask 130048   ;;  %v987_v33 = vld [vmem:[%s386_s9] sm:$0xff]   ;;  %s1212_s10 = smov (!%p432_p10, %s884_s10), 3 }
  0x2a   : > { %914 = vmatpush3.bf16.xpose.msra.mxu0 %v472_v10  ;;  %s430_s7 = scalar_lea.vmem %s1202_s3, %s429_s30  ;;  %920 = vmatpush3.bf16.msra.mxu1 %v987_v33  ;;  %s885_s11 = sshll.u32 %s1212_s10, 2 }
  0x2b   : > { %931 = vmatprep.subr.bf16.mxu0 %v1044_v6  ;;  %v887_v13 = vcombine.low %v445_v11, %v446_v12  ;;  %v886_v14 = vld [vmem:[%s430_s7] ss:$0 sm:$0xff]  ;;  %925 = vmatprep.subr.bf16.mxu1 %v1044_v6  ;;  %s438_s14 = scalar_lea.vmem %s1203_s4, %s885_s11 }
  0x31   : > { %916 = vmatmul.mubr.msk.bf16.vlgmr.msra.gmra.mxu0 %vm467_vm1, %v887_v13 }
  0x32   : > { %933 = vmatprep.mubr.msk.bf16.mxu0 %vm1045_vm0, %v1044_v6 }
  0xf1   : > { %v508_v15 = vpop.f32.mrf.mxu0 }
  0xf2   : > { %v509_v16 = vadd.f32 %v886_v14, %v508_v15 }
  0xf3   : > { %v917_v17 = vpop.f32.mrf.mxu0 }
  0xf4   : > { %v516_v18 = vsel %vm515_vm2, %v509_v16, -inf }
  0xf5   : > { %517 = vmax.xlane.f32.xlu0 %v516_v18  ;;  %v511_v19 = vpop.f32.mrf.mxu0 }
  0xf6   : > { %v512_v20 = vadd.f32 %v886_v14, %v511_v19 }
  0xf7   : > { %v918_v21 = vpop.f32.mrf.mxu0 }
  0xf8   : > { %v519_v22 = vsel %vm515_vm2, %v512_v20, -inf }
  0xf9   : > { %520 = vmax.xlane.f32.xlu0 %v519_v22 }
 0x10f   : > { %591 = vrot.lane.b32.xlu0 %v986_v7, %s1046_s8 }
 0x17e   : > { %v518_v23 = vpop.xlane.xlu0 %517 }
 0x17f   : > { %v522_v24 = vsub.f32 %v509_v16, %v518_v23 }
 0x181   : > { %v524_v25 = vmul.f32 1.442695, %v522_v24 }
 0x182   : > { %v521_v26 = vpop.xlane.xlu0 %520 }
 0x183   : > { %988 = vpow2.f32 %v524_v25  ;;  %v523_v27 = vsub.f32 %v512_v20, %v521_v26 }
 0x185   : > { %v526_v28 = vmul.f32 1.442695, %v523_v27 }
 0x186   : > { %v592_v38 = vpop.permute.xlu0 %591 }
 0x187   : > { %990 = vpow2.f32 %v526_v28  ;;  %v597_v41 = vsel %vm467_vm1, %v592_v38, 0 }
 0x190   : > { %v989_v29 = vpop.eup %988 }
 0x191   : > { %v528_v30 = vsel %vm515_vm2, %v989_v29, 0.0 }
 0x192   : > { %529 = vadd.xlane.f32.xlu1 %v528_v30 }
 0x194   : > { %v991_v31 = vpop.eup %990 }
 0x195   : > { %v531_v32 = vsel %vm515_vm2, %v991_v31, 0.0 }
 0x196   : > { %532 = vadd.xlane.f32.xlu1 %v531_v32 }
 0x1a7   : > { %589 = vrot.lane.b32.xlu1 %v887_v13, %s1046_s8 }
 0x21b   : > { %v530_v34 = vpop.xlane.xlu1 %529 }
 0x21c   : > { %992 = vrcp.f32 %v530_v34 }
 0x21f   : > { %v533_v35 = vpop.xlane.xlu1 %532 }
 0x220   : > { %994 = vrcp.f32 %v533_v35 }
 0x223   : > { %v590_v43 = vpop.permute.xlu1 %589 }
 0x229   : > { %v993_v36 = vpop.eup %992 }
 0x22a   : > { %v536_v39 = vmul.f32 %v993_v36, %v989_v29 }
 0x22d   : > { %v995_v37 = vpop.eup %994 }
 0x22e   : > { %v537_v40 = vmul.f32 %v995_v37, %v991_v31 }
 0x230   : > { %v538_v42 = vpack.c.bf16 %v537_v40, %v536_v39 }
 0x232   : > { %922 = vmatmul.mubr.msk.bf16.vlgmr.msra.gmra.mxu1 %vm515_vm2, %v538_v42 }
 0x233   : > { %926 = vmatpush3.bf16.xpose.msra.mxu1 %v597_v41  ;;  %927 = vmatprep.mubr.msk.bf16.mxu1 %vm1045_vm0, %v1044_v6 }
 0x23a   : > { %928 = vmatmul.mubr.msk.bf16.vlgmr.msra.gmra.mxu1 %vm467_vm1, %v590_v43 }
 0x2f2   : > { %v582_v44 = vpop.f32.mrf.mxu1 }
 0x2f4   : > { %v923_v45 = vpop.f32.mrf.mxu1 }
 0x2f6   : > { %v585_v46 = vpop.f32.mrf.mxu1 }
 0x2f8   : > { %v924_v47 = vpop.f32.mrf.mxu1 }
 0x2fa   : > { %v633_v48 = vpop.f32.mrf.mxu1 }
 0x2fb   : > { %v634_v49 = vadd.f32 %v886_v14, %v633_v48 }
 0x2fc   : > { %v929_v50 = vpop.f32.mrf.mxu1 }
 0x2fd   : > { %v640_v51 = vsel %vm515_vm2, %v634_v49, -inf }
 0x2fe   : > { %641 = vmax.xlane.f32.xlu1 %v640_v51  ;;  %v636_v52 = vpop.f32.mrf.mxu1 }
 0x2ff   : > { %v637_v53 = vadd.f32 %v886_v14, %v636_v52 }
 0x300   : > { %v930_v54 = vpop.f32.mrf.mxu1 }
 0x301   : > { %v643_v55 = vsel %vm515_vm2, %v637_v53, -inf }
 0x302   : > { %644 = vmax.xlane.f32.xlu0 %v643_v55 }
 0x387   : > { %v642_v56 = vpop.xlane.xlu1 %641 }
 0x388   : > { %v646_v57 = vsub.f32 %v634_v49, %v642_v56 }
 0x38a   : > { %v648_v58 = vmul.f32 1.442695, %v646_v57 }
 0x38b   : > { %v645_v59 = vpop.xlane.xlu0 %644 }
 0x38c   : > { %996 = vpow2.f32 %v648_v58  ;;  %v647_v60 = vsub.f32 %v637_v53, %v645_v59 }
 0x38e   : > { %v650_v61 = vmul.f32 1.442695, %v647_v60 }
 0x390   : > { %998 = vpow2.f32 %v650_v61 }
 0x399   : > { %v997_v62 = vpop.eup %996 }
 0x39a   : > { %v652_v63 = vsel %vm515_vm2, %v997_v62, 0.0 }
 0x39b   : > { %653 = vadd.xlane.f32.xlu0 %v652_v63 }
 0x39d   : > { %v999_v0 = vpop.eup %998 }
 0x39e   : > { %v655_v1 = vsel %vm515_vm2, %v999_v0, 0.0 }
 0x39f   : > { %656 = vadd.xlane.f32.xlu1 %v655_v1 }
 0x3b1   : > { %663 = vrot.lane.b32.xlu0 %v987_v33, %s1046_s8 }
 0x424   : > { %v654_v2 = vpop.xlane.xlu0 %653 }
 0x425   : > { %1000 = vrcp.f32 %v654_v2 }
 0x428   : > { %v657_v3 = vpop.xlane.xlu1 %656  ;;  %v664_v4 = vpop.permute.xlu0 %663 }
 0x429   : > { %1002 = vrcp.f32 %v657_v3  ;;  %932 = vmatpush3.bf16.msra.mxu0 %v664_v4 }
 0x432   : > { %v1001_v5 = vpop.eup %1000 }
 0x433   : > { %v660_v7 = vmul.f32 %v1001_v5, %v997_v62 }
 0x436   : > { %v1003_v6 = vpop.eup %1002 }
 0x437   : > { %v661_v8 = vmul.f32 %v1003_v6, %v999_v0 }
 0x439   : > { %v662_v9 = vpack.c.bf16 %v661_v8, %v660_v7 }
 0x43b   : > { %934 = vmatmul.mubr.msk.bf16.vlgmr.msra.gmra.mxu0 %vm515_vm2, %v662_v9 }
 0x4fb   : > { %v703_v10 = vpop.f32.mrf.mxu0 }
 0x4fd   : > { %v935_v11 = vpop.f32.mrf.mxu0 }
 0x4ff   : > { %v706_v12 = vpop.f32.mrf.mxu0 }
 0x500   : > { %v981_v13 = vpack.i.bf16 %v706_v12, %v703_v10 }
 0x501   : > { %v936_v14 = vpop.f32.mrf.mxu0 }
 0x502   : > { %982 = vrot.lane.b32.xlu1 %v981_v13, %s1046_s8 }
 0x574   : > { %v983_v15 = vpop.permute.xlu1 %982 }
 0x575   : > { %v985_v16 = vunpack.i.h.bf16 %v983_v15  ;;  %v984_v17 = vunpack.i.l.bf16 %v983_v15 }
 0x577   : > { %v719_v18 = vsel %vm467_vm1, %v585_v46, %v985_v16  ;;  %v718_v19 = vsel %vm467_vm1, %v582_v44, %v984_v17 }
 0x578   : > { %v903_v20 = vpack.c.bf16 %v719_v18, %v718_v19 }
 0x57a   : > { %904 = vst [vmem:[%s438_s14] sm:$0xff] %v903_v20  }
 0x57b PF: > { %s14_s19 = sadd.s32 1, %s1042_s19   ;;  %s1205_s15 = smov %s1030_s16 }
 0x57c   : > { %p11_p11 = scmp.ge.s32.totalorder %s14_s19, 4   ;;  %s1206_s16 = smov %s1111_s24 }
 0x57d   : > { %s1207_s17 = smov %s1038_s18  ;;  %s1208_s18 = smov %s1210_s20 }
 0x57e   :  { %13 = sbr.rel (!%p11_p11) target bundleno = 3 (0x3), region = 213 }

// kernel: bert_classifier_forward.18
= control target key start
LH: loop header
LB: loop body
LE: loop exit
PB: predicated region body
PF: predicated region fallthrough
CT: control target
= control target key end

     0   :  { %s224_s0 = inlined_call_operand.vmem [shape: bf16[32,128], index: 0, kind: input, shape index: {}]   ;;  %s225_s1 = inlined_call_operand.vmem [shape: bf16[32,128], index: 1, kind: input, shape index: {}]   ;;  %s226_s2 = inlined_call_operand.vmem [shape: f32[1,128], index: 2, kind: input, shape index: {}]   ;;  %s227_s3 = inlined_call_operand.vmem [shape: f32[1,128], index: 3, kind: input, shape index: {}]   ;;  %s228_s4 = inlined_call_operand.vmem [shape: bf16[32,128], index: 4, kind: output, shape index: {}]  }
   0x1   :  { %v139_v0 = vld [vmem:[%s224_s0] sm:$0xff]   ;;  %v164_v2 = vld [vmem:[%s224_s0 + $0x8] sm:$0xff]  }
   0x2   :  { %v147_v1 = vld [vmem:[%s225_s1] sm:$0xff]   ;;  %v140_v3 = vunpack.c.l.bf16 %v139_v0  ;;  %v144_v5 = vunpack.c.l.bf16 %v164_v2  ;;  %v165_v6 = vld [vmem:[%s225_s1 + $0x8] sm:$0xff]   ;;  %v141_v7 = vunpack.c.h.bf16 %v139_v0  ;;  %v145_v10 = vunpack.c.h.bf16 %v164_v2 }
   0x3   :  { %v148_v4 = vunpack.c.l.bf16 %v147_v1  ;;  %v152_v8 = vunpack.c.l.bf16 %v165_v6  ;;  %v149_v9 = vunpack.c.h.bf16 %v147_v1  ;;  %v153_v11 = vunpack.c.h.bf16 %v165_v6  ;;  %v128_v46 = vld [vmem:[%s226_s2] ss:$0 sm:$0xff] }
   0x4   :  { %v129_v51 = vld [vmem:[%s227_s3] ss:$0 sm:$0xff] }
   0x5   :  { %v33_v12 = vadd.f32 %v148_v4, %v140_v3  ;;  %v35_v13 = vadd.f32 %v152_v8, %v144_v5  ;;  %v34_v14 = vadd.f32 %v149_v9, %v141_v7  ;;  %v36_v15 = vadd.f32 %v153_v11, %v145_v10 }
   0x7   :  { %37 = vadd.xlane.f32.xlu0 %v33_v12  ;;  %41 = vadd.xlane.f32.xlu1 %v35_v13 }
   0xb   :  { %39 = vadd.xlane.f32.xlu0 %v34_v14  ;;  %43 = vadd.xlane.f32.xlu1 %v36_v15 }
  0x90   :  { %v38_v16 = vpop.xlane.xlu0 %37  ;;  %v42_v18 = vpop.xlane.xlu1 %41 }
  0x91   :  { %v46_v17 = vmul.f32 0.0078125, %v38_v16  ;;  %v48_v19 = vmul.f32 0.0078125, %v42_v18 }
  0x93   :  { %v50_v20 = vsub.f32 %v33_v12, %v46_v17  ;;  %v52_v21 = vsub.f32 %v35_v13, %v48_v19 }
  0x94   :  { %v40_v22 = vpop.xlane.xlu0 %39  ;;  %v44_v25 = vpop.xlane.xlu1 %43 }
  0x95   :  { %v47_v23 = vmul.f32 0.0078125, %v40_v22  ;;  %v54_v24 = vmul.f32 %v50_v20, %v50_v20  ;;  %v49_v26 = vmul.f32 0.0078125, %v44_v25  ;;  %v56_v28 = vmul.f32 %v52_v21, %v52_v21 }
  0x97   :  { %v51_v27 = vsub.f32 %v34_v14, %v47_v23  ;;  %58 = vadd.xlane.f32.xlu0 %v54_v24  ;;  %v53_v29 = vsub.f32 %v36_v15, %v49_v26 }
  0x99   :  { %v55_v30 = vmul.f32 %v51_v27, %v51_v27  ;;  %v57_v31 = vmul.f32 %v53_v29, %v53_v29 }
  0x9b   :  { %62 = vadd.xlane.f32.xlu0 %v56_v28  ;;  %60 = vadd.xlane.f32.xlu1 %v55_v30 }
  0x9f   :  { %64 = vadd.xlane.f32.xlu1 %v57_v31 }
 0x120   :  { %v59_v32 = vpop.xlane.xlu0 %58 }
 0x121   :  { %v66_v33 = vmul.f32 0.0078125, %v59_v32 }
 0x123   :  { %v70_v34 = vadd.f32 1e-12, %v66_v33 }
 0x124   :  { %v61_v35 = vpop.xlane.xlu1 %60  ;;  %v63_v36 = vpop.xlane.xlu0 %62 }
 0x125   :  { %167 = vrsqrt.f32 %v70_v34  ;;  %v67_v37 = vmul.f32 0.0078125, %v61_v35  ;;  %v68_v38 = vmul.f32 0.0078125, %v63_v36 }
 0x127   :  { %v71_v39 = vadd.f32 1e-12, %v67_v37  ;;  %v72_v40 = vadd.f32 1e-12, %v68_v38 }
 0x128   :  { %v65_v41 = vpop.xlane.xlu1 %64 }
 0x129   :  { %169 = vrsqrt.f32 %v71_v39  ;;  %v69_v42 = vmul.f32 0.0078125, %v65_v41 }
 0x12a   :  { %171 = vrsqrt.f32 %v72_v40 }
 0x12b   :  { %v73_v43 = vadd.f32 1e-12, %v69_v42 }
 0x12d   :  { %173 = vrsqrt.f32 %v73_v43 }
 0x132   :  { %v168_v44 = vpop.eup %167 }
 0x133   :  { %v78_v45 = vmul.f32 %v168_v44, %v50_v20 }
 0x135   :  { %v89_v49 = vmul.f32 %v128_v46, %v78_v45 }
 0x136   :  { %v170_v47 = vpop.eup %169 }
 0x137   :  { %v172_v48 = vpop.eup %171  ;;  %v79_v50 = vmul.f32 %v170_v47, %v51_v27  ;;  %v100_v55 = vadd.f32 %v129_v51, %v89_v49 }
 0x138   :  { %v80_v52 = vmul.f32 %v172_v48, %v52_v21 }
 0x139   :  { %v90_v53 = vmul.f32 %v128_v46, %v79_v50 }
 0x13a   :  { %v174_v54 = vpop.eup %173  ;;  %v91_v57 = vmul.f32 %v128_v46, %v80_v52 }
 0x13b   :  { %v101_v56 = vadd.f32 %v129_v51, %v90_v53  ;;  %v81_v58 = vmul.f32 %v174_v54, %v53_v29 }
 0x13c   :  { %v102_v61 = vadd.f32 %v129_v51, %v91_v57 }
 0x13d   :  { %v157_v59 = vpack.c.bf16 %v101_v56, %v100_v55  ;;  %v92_v60 = vmul.f32 %v128_v46, %v81_v58 }
 0x13f   :  { %158 = vst [vmem:[%s228_s4] sm:$0xff] %v157_v59   ;;  %v103_v62 = vadd.f32 %v129_v51, %v92_v60 }
 0x141   :  { %v162_v63 = vpack.c.bf16 %v103_v62, %v102_v61 }
 0x143   :  { %166 = vst [vmem:[%s228_s4 + $0x8] sm:$0xff] %v162_v63  }

// kernel: bert_classifier_forward.19
= control target key start
LH: loop header
LB: loop body
LE: loop exit
PB: predicated region body
PF: predicated region fallthrough
CT: control target
= control target key end

     0   :  { %v623_v1 = vmov 0   ;;  %v43_v35 = vlaneseq  ;;  %s817_s1 = inlined_call_operand.vmem [shape: bf16[128,256], index: 1, kind: input, shape index: {}]   ;;  %s818_s0 = inlined_call_operand.vmem [shape: bf16[32,128], index: 0, kind: input, shape index: {}]   ;;  %s819_s3 = inlined_call_operand.vmem [shape: bf16[256,128], index: 3, kind: input, shape index: {}]   ;;  %s820_s2 = inlined_call_operand.vmem [shape: f32[1,256], index: 2, kind: input, shape index: {}]   ;;  %s821_s4 = inlined_call_operand.vmem [shape: f32[1,128], index: 4, kind: input, shape index: {}]   ;;  %s822_s5 = inlined_call_operand.vmem [shape: bf16[32,128], index: 5, kind: output, shape index: {}]  }
   0x1   :  { %v565_v0 = vld [vmem:[%s817_s1 + $0x74] ss:$8 sps:$4 sm:$0xff]   ;;  %177 = vmatprep.mubr.bf16.mxu0 %v623_v1  ;;  %v567_v2 = vld [vmem:[%s817_s1 + $0x70] ss:$8 sps:$4 sm:$0xff]   ;;  %v568_v3 = vld [vmem:[%s817_s1 + $0x64] ss:$8 sps:$4 sm:$0xff]  }
   0x2   :  { %145 = vmatprep.subr.bf16.mxu0 %v565_v0  ;;  %v570_v4 = vld [vmem:[%s817_s1 + $0x60] ss:$8 sps:$4 sm:$0xff]   ;;  %v571_v5 = vld [vmem:[%s817_s1 + $0x54] ss:$8 sps:$4 sm:$0xff]   ;;  %v573_v6 = vld [vmem:[%s817_s1 + $0x50] ss:$8 sps:$4 sm:$0xff]  }
   0x3   :  { %146 = vmatpush1.bf16.msra.mxu0 %v567_v2  ;;  %v574_v7 = vld [vmem:[%s817_s1 + $0x44] ss:$8 sps:$4 sm:$0xff]   ;;  %v576_v8 = vld [vmem:[%s817_s1 + $0x40] ss:$8 sps:$4 sm:$0xff]   ;;  %v577_v9 = vld [vmem:[%s817_s1 + $0x34] ss:$8 sps:$4 sm:$0xff]  }
   0x4   :  { %147 = vmatprep.subr.bf16.mxu0 %v568_v3  ;;  %v579_v10 = vld [vmem:[%s817_s1 + $0x30] ss:$8 sps:$4 sm:$0xff]   ;;  %v580_v11 = vld [vmem:[%s817_s1 + $0x24] ss:$8 sps:$4 sm:$0xff]   ;;  %v582_v12 = vld [vmem:[%s817_s1 + $0x20] ss:$8 sps:$4 sm:$0xff]  }
   0x5   :  { %v583_v13 = vld [vmem:[%s817_s1 + $0x14] ss:$8 sps:$4 sm:$0xff]   ;;  %v585_v14 = vld [vmem:[%s817_s1 + $0x10] ss:$8 sps:$4 sm:$0xff]   ;;  %v586_v15 = vld [vmem:[%s817_s1 + $0x4] ss:$8 sps:$4 sm:$0xff]  }
   0x6   :  { %v588_v16 = vld [vmem:[%s817_s1] ss:$8 sps:$4 sm:$0xff]   ;;  %v591_v19 = vld [vmem:[%s819_s3 + $0x78] sm:$0xff]   ;;  %v593_v21 = vld [vmem:[%s819_s3 + $0x70] sm:$0xff]   ;;  %v44_v36 = vshrl.u32 %v43_v35, 7 }
   0x7   :  { %148 = vmatpush1.bf16.msra.mxu0 %v570_v4  ;;  %v589_v17 = vld [vmem:[%s818_s0] sm:$0xff]   ;;  %v590_v18 = vld [vmem:[%s818_s0 + $0x8] sm:$0xff]   ;;  %v592_v20 = vld [vmem:[%s819_s3 + $0x38] sm:$0xff]   ;;  %536 = vmatprep.subr.bf16.mxu1 %v591_v19 }
   0x8   :  { %149 = vmatprep.subr.bf16.mxu0 %v571_v5  ;;  %537 = vmatpush3.bf16.msra.mxu1 %v592_v20  ;;  %v594_v22 = vld [vmem:[%s819_s3 + $0x30] sm:$0xff]   ;;  %v595_v23 = vld [vmem:[%s819_s3 + $0x68] sm:$0xff]   ;;  %v597_v25 = vld [vmem:[%s819_s3 + $0x60] sm:$0xff]   ;;  %v45_v37 = vsub.s32 0, %v44_v36  ;;  %v49_v39 = vsub.s32 1, %v44_v36 }
   0x9   :  { %538 = vmatprep.subr.bf16.mxu1 %v593_v21  ;;  %v596_v24 = vld [vmem:[%s819_s3 + $0x28] sm:$0xff]   ;;  %v598_v26 = vld [vmem:[%s819_s3 + $0x20] sm:$0xff]   ;;  %v599_v27 = vld [vmem:[%s819_s3 + $0x58] sm:$0xff]  }
   0xa   :  { %v600_v28 = vld [vmem:[%s819_s3 + $0x18] sm:$0xff]   ;;  %v601_v29 = vld [vmem:[%s819_s3 + $0x50] sm:$0xff]   ;;  %v603_v31 = vld [vmem:[%s819_s3 + $0x48] sm:$0xff]  }
   0xb   :  { %150 = vmatpush1.bf16.msra.mxu0 %v573_v6  ;;  %v602_v30 = vld [vmem:[%s819_s3 + $0x10] sm:$0xff]   ;;  %v604_v32 = vld [vmem:[%s819_s3 + $0x8] sm:$0xff]   ;;  %v605_v33 = vld [vmem:[%s819_s3 + $0x40] sm:$0xff]  }
   0xc   :  { %151 = vmatprep.subr.bf16.mxu0 %v574_v7  ;;  %539 = vmatpush3.bf16.msra.mxu1 %v594_v22  ;;  %v606_v34 = vld [vmem:[%s819_s3] sm:$0xff]  }
   0xd   :  { %540 = vmatprep.subr.bf16.mxu1 %v595_v23  ;;  %v41_v38 = vld [vmem:[%s820_s2] sm:$0x3] }
   0xe   :  { %v46_v40 = vrot.slane %v41_v38, %v45_v37  ;;  %v50_v41 = vrot.slane %v41_v38, %v49_v39 }
   0xf   :  { %152 = vmatpush1.bf16.msra.mxu0 %v576_v8 }
  0x10   :  { %153 = vmatprep.subr.bf16.mxu0 %v577_v9  ;;  %541 = vmatpush3.bf16.msra.mxu1 %v596_v24 }
  0x11   :  { %542 = vmatprep.subr.bf16.mxu1 %v597_v25 }
  0x13   :  { %154 = vmatpush1.bf16.msra.mxu0 %v579_v10 }
  0x14   :  { %155 = vmatprep.subr.bf16.mxu0 %v580_v11  ;;  %543 = vmatpush3.bf16.msra.mxu1 %v598_v26 }
  0x15   :  { %544 = vmatprep.subr.bf16.mxu1 %v599_v27 }
  0x17   :  { %156 = vmatpush1.bf16.msra.mxu0 %v582_v12 }
  0x18   :  { %157 = vmatprep.subr.bf16.mxu0 %v583_v13  ;;  %545 = vmatpush3.bf16.msra.mxu1 %v600_v28 }
  0x19   :  { %546 = vmatprep.subr.bf16.mxu1 %v601_v29 }
  0x1b   :  { %158 = vmatpush1.bf16.msra.mxu0 %v585_v14 }
  0x1c   :  { %159 = vmatprep.subr.bf16.mxu0 %v586_v15  ;;  %547 = vmatpush3.bf16.msra.mxu1 %v602_v30 }
  0x1d   :  { %548 = vmatprep.subr.bf16.mxu1 %v603_v31 }
  0x1f   :  { %160 = vmatpush1.bf16.msra.mxu0 %v588_v16 }
  0x20   :  { %549 = vmatpush3.bf16.msra.mxu1 %v604_v32 }
  0x21   :  { %550 = vmatprep.subr.bf16.mxu1 %v605_v33 }
  0x22   :  { %178 = vmatmul.mubr.bf16.vlgmr.msra.gmra.mxu0 %v589_v17 }
  0x23   :  { %187 = vmatprep.mubr.bf16.mxu0 %v623_v1 }
  0x24   :  { %551 = vmatpush3.bf16.msra.mxu1 %v606_v34 }
  0x2a   :  { %188 = vmatmul.mubr.bf16.gmra.mxu0 %v590_v18 }
  0xe2   :  { %v179_v42 = vpop.f32.mrf.mxu0 }
  0xe3   :  { %v759_v43 = vadd.f32 %v179_v42, %v46_v40 }
  0xe4   :  { %v181_v44 = vpop.f32.mrf.mxu0 }
  0xe5   :  { %v198_v45 = vmul.f32 %v759_v43, %v759_v43  ;;  %v763_v46 = vadd.f32 %v181_v44, %v50_v41 }
  0xe6   :  { %v183_v47 = vpop.f32.mrf.mxu0 }
  0xe7   :  { %v206_v48 = vmul.f32 %v198_v45, %v759_v43  ;;  %v199_v49 = vmul.f32 %v763_v46, %v763_v46  ;;  %v768_v50 = vadd.f32 %v183_v47, %v46_v40 }
  0xe8   :  { %v185_v51 = vpop.f32.mrf.mxu0 }
  0xe9   :  { %v214_v52 = vmul.f32 0.044715, %v206_v48  ;;  %v207_v53 = vmul.f32 %v199_v49, %v763_v46  ;;  %v200_v54 = vmul.f32 %v768_v50, %v768_v50  ;;  %v773_v55 = vadd.f32 %v185_v51, %v50_v41 }
  0xea   :  { %v189_v56 = vpop.f32.mrf.mxu0 }
  0xeb   :  { %v222_v57 = vadd.f32 %v214_v52, %v759_v43  ;;  %v215_v58 = vmul.f32 0.044715, %v207_v53  ;;  %v208_v59 = vmul.f32 %v200_v54, %v768_v50  ;;  %v201_v60 = vmul.f32 %v773_v55, %v773_v55 }
  0xec   :  { %v779_v61 = vadd.f32 %v189_v56, %v46_v40  ;;  %v191_v62 = vpop.f32.mrf.mxu0 }
  0xed   :  { %v230_v63 = vmul.f32 0.7978846, %v222_v57  ;;  %v223_v0 = vadd.f32 %v215_v58, %v763_v46  ;;  %v216_v1 = vmul.f32 0.044715, %v208_v59  ;;  %v209_v2 = vmul.f32 %v201_v60, %v773_v55 }
  0xee   :  { %v202_v3 = vmul.f32 %v779_v61, %v779_v61  ;;  %v785_v4 = vadd.f32 %v191_v62, %v50_v41  ;;  %v193_v5 = vpop.f32.mrf.mxu0 }
  0xef   :  { %v224_v6 = vadd.f32 %v216_v1, %v768_v50  ;;  %v217_v7 = vmul.f32 0.044715, %v209_v2  ;;  %v788_v8 = vadd.f32 %v193_v5, %v46_v40  ;;  %607 = vtanh.f32 %v230_v63 }
  0xf0   :  { %v210_v9 = vmul.f32 %v202_v3, %v779_v61  ;;  %v203_v10 = vmul.f32 %v785_v4, %v785_v4  ;;  %v195_v11 = vpop.f32.mrf.mxu0  ;;  %v231_v12 = vmul.f32 0.7978846, %v223_v0 }
  0xf1   :  { %v232_v13 = vmul.f32 0.7978846, %v224_v6  ;;  %v225_v14 = vadd.f32 %v217_v7, %v773_v55  ;;  %v204_v15 = vmul.f32 %v788_v8, %v788_v8  ;;  %v196_v16 = vadd.f32 %v195_v11, %v50_v41 }
  0xf2   :  { %v218_v17 = vmul.f32 0.044715, %v210_v9  ;;  %v211_v18 = vmul.f32 %v203_v10, %v785_v4  ;;  %609 = vtanh.f32 %v231_v12 }
  0xf3   :  { %611 = vtanh.f32 %v232_v13  ;;  %v212_v19 = vmul.f32 %v204_v15, %v788_v8  ;;  %v205_v20 = vmul.f32 %v196_v16, %v196_v16  ;;  %v233_v21 = vmul.f32 0.7978846, %v225_v14  ;;  %v500_v13 = vld [vmem:[%s821_s4] ss:$0 sm:$0xff] }
  0xf4   :  { %v226_v22 = vadd.f32 %v218_v17, %v779_v61  ;;  %v219_v23 = vmul.f32 0.044715, %v211_v18 }
  0xf5   :  { %v220_v24 = vmul.f32 0.044715, %v212_v19  ;;  %v213_v25 = vmul.f32 %v205_v20, %v196_v16  ;;  %613 = vtanh.f32 %v233_v21 }
  0xf6   :  { %v234_v26 = vmul.f32 0.7978846, %v226_v22  ;;  %v227_v27 = vadd.f32 %v219_v23, %v785_v4 }
  0xf7   :  { %v228_v28 = vadd.f32 %v220_v24, %v788_v8  ;;  %v221_v29 = vmul.f32 0.044715, %v213_v25 }
  0xf8   :  { %615 = vtanh.f32 %v234_v26  ;;  %v235_v30 = vmul.f32 0.7978846, %v227_v27 }
  0xf9   :  { %v236_v31 = vmul.f32 0.7978846, %v228_v28  ;;  %v229_v32 = vadd.f32 %v221_v29, %v196_v16 }
  0xfa   :  { %617 = vtanh.f32 %v235_v30 }
  0xfb   :  { %619 = vtanh.f32 %v236_v31  ;;  %v237_v33 = vmul.f32 0.7978846, %v229_v32 }
  0xfc   :  { %v608_v34 = vpop.eup %607 }
  0xfd   :  { %621 = vtanh.f32 %v237_v33  ;;  %v246_v38 = vadd.f32 1.0, %v608_v34 }
  0xff   :  { %v610_v35 = vpop.eup %609  ;;  %v254_v45 = vmul.f32 0.5, %v246_v38 }
 0x100   :  { %v612_v36 = vpop.eup %611  ;;  %v247_v37 = vadd.f32 1.0, %v610_v35 }
 0x101   :  { %v248_v39 = vadd.f32 1.0, %v612_v36  ;;  %v262_v56 = vmul.f32 %v254_v45, %v759_v43 }
 0x102   :  { %v614_v40 = vpop.eup %613  ;;  %v255_v42 = vmul.f32 0.5, %v247_v37 }
 0x103   :  { %v249_v41 = vadd.f32 1.0, %v614_v40  ;;  %v256_v44 = vmul.f32 0.5, %v248_v39 }
 0x104   :  { %v263_v52 = vmul.f32 %v255_v42, %v763_v46 }
 0x105   :  { %v616_v47 = vpop.eup %615  ;;  %v257_v48 = vmul.f32 0.5, %v249_v41  ;;  %v264_v49 = vmul.f32 %v256_v44, %v768_v50 }
 0x106   :  { %v250_v58 = vadd.f32 1.0, %v616_v47 }
 0x107   :  { %v618_v51 = vpop.eup %617  ;;  %v265_v53 = vmul.f32 %v257_v48, %v773_v55  ;;  %v270_v63 = vpack.c.bf16 %v264_v49, %v262_v56 }
 0x108   :  { %v620_v54 = vpop.eup %619  ;;  %v251_v57 = vadd.f32 1.0, %v618_v51  ;;  %v258_v50 = vmul.f32 0.5, %v250_v58 }
 0x109   :  { %v271_v59 = vpack.c.bf16 %v265_v53, %v263_v52  ;;  %v252_v60 = vadd.f32 1.0, %v620_v54 }
 0x10a   :  { %v622_v62 = vpop.eup %621  ;;  %v259_v1 = vmul.f32 0.5, %v251_v57  ;;  %v266_v43 = vmul.f32 %v258_v50, %v779_v61 }
 0x10b   :  { %441 = vmatprep.mubr.bf16.mxu1 %v271_v59  ;;  %v253_v0 = vadd.f32 1.0, %v622_v62  ;;  %v260_v2 = vmul.f32 0.5, %v252_v60 }
 0x10c   :  { %442 = vmatmul.mubr.bf16.vlgmr.msra.gmra.mxu1 %v270_v63  ;;  %v267_v55 = vmul.f32 %v259_v1, %v785_v4 }
 0x10d   :  { %v261_v3 = vmul.f32 0.5, %v253_v0  ;;  %v268_v46 = vmul.f32 %v260_v2, %v788_v8 }
 0x10f   :  { %v269_v5 = vmul.f32 %v261_v3, %v196_v16  ;;  %v272_v7 = vpack.c.bf16 %v268_v46, %v266_v43 }
 0x111   :  { %v273_v6 = vpack.c.bf16 %v269_v5, %v267_v55 }
 0x113   :  { %449 = vmatprep.mubr.bf16.mxu1 %v273_v6 }
 0x114   :  { %450 = vmatmul.mubr.bf16.gmra.mxu1 %v272_v7 }
 0x1cc   :  { %v552_v9 = vpop.f32.mrf.mxu1 }
 0x1ce   :  { %v553_v10 = vpop.f32.mrf.mxu1 }
 0x1cf   :  { %v554_v12 = vadd.f32 %v553_v10, %v552_v9 }
 0x1d0   :  { %v555_v11 = vpop.f32.mrf.mxu1 }
 0x1d1   :  { %v444_v17 = vadd.f32 %v554_v12, %v500_v13 }
 0x1d2   :  { %v556_v14 = vpop.f32.mrf.mxu1 }
 0x1d3   :  { %v557_v15 = vadd.f32 %v556_v14, %v555_v11 }
 0x1d4   :  { %v558_v8 = vpop.f32.mrf.mxu1 }
 0x1d5   :  { %v447_v4 = vadd.f32 %v557_v15, %v500_v13 }
 0x1d6   :  { %v559_v16 = vpop.f32.mrf.mxu1 }
 0x1d7   :  { %v528_v18 = vpack.c.bf16 %v447_v4, %v444_v17  ;;  %v560_v19 = vadd.f32 %v559_v16, %v558_v8 }
 0x1d8   :  { %v561_v61 = vpop.f32.mrf.mxu1 }
 0x1d9   :  { %529 = vst [vmem:[%s822_s5] sm:$0xff] %v528_v18   ;;  %v452_v22 = vadd.f32 %v560_v19, %v500_v13 }
 0x1da   :  { %v562_v20 = vpop.f32.mrf.mxu1 }
 0x1db   :  { %v563_v21 = vadd.f32 %v562_v20, %v561_v61 }
 0x1dd   :  { %v455_v23 = vadd.f32 %v563_v21, %v500_v13 }
 0x1df   :  { %v533_v24 = vpack.c.bf16 %v455_v23, %v452_v22 }
 0x1e1   :  { %535 = vst [vmem:[%s822_s5 + $0x8] sm:$0xff] %v533_v24  }

// kernel: bert_classifier_forward.27
= control target key start
LH: loop header
LB: loop body
LE: loop exit
PB: predicated region body
PF: predicated region fallthrough
CT: control target
= control target key end

     0   :  { %v381_v1 = vmov 0.0   ;;  %vm382_vm0 = vmmov 0   ;;  %s474_s0 = inlined_call_operand.vmem [shape: bf16[2,128], index: 0, kind: input, shape index: {}]   ;;  %s475_s1 = inlined_call_operand.vmem [shape: bf16[128,128], index: 1, kind: input, shape index: {}]   ;;  %s476_s2 = inlined_call_operand.vmem [shape: f32[1,128], index: 2, kind: input, shape index: {}]   ;;  %s477_s3 = inlined_call_operand.vmem [shape: bf16[128,128], index: 3, kind: input, shape index: {}]   ;;  %s478_s4 = inlined_call_operand.vmem [shape: f32[1,128], index: 4, kind: input, shape index: {}]   ;;  %s479_s5 = inlined_call_operand.hbm [shape: f32[2,128], index: 5, kind: output, shape index: {}]  }
   0x1   :  { %v341_v0 = vld [vmem:[%s475_s1 + $0x38] sm:$0xff]   ;;  %298 = vmatprep.subr.bf16.mxu0 %v381_v1  ;;  %318 = vmatprep.subr.bf16.mxu1 %v381_v1  ;;  %v342_v2 = vld [vmem:[%s475_s1 + $0x30] sm:$0xff]   ;;  %v343_v3 = vld [vmem:[%s475_s1 + $0x28] sm:$0xff]  }
   0x2   :  { %299 = vmatpush3.bf16.msra.mxu0 %v341_v0  ;;  %314 = vmatprep.mubr.msk.bf16.mxu0 %vm382_vm0, %v381_v1  ;;  %v349_v4 = vld [vmem:[%s477_s3 + $0x38] sm:$0xff]   ;;  %v344_v5 = vld [vmem:[%s475_s1 + $0x20] sm:$0xff]   ;;  %v350_v6 = vld [vmem:[%s477_s3 + $0x30] sm:$0xff]  }
   0x3   :  { %300 = vmatprep.subr.bf16.mxu0 %v381_v1  ;;  %334 = vmatprep.mubr.msk.bf16.mxu1 %vm382_vm0, %v381_v1  ;;  %v345_v7 = vld [vmem:[%s475_s1 + $0x18] sm:$0xff]   ;;  %v351_v8 = vld [vmem:[%s477_s3 + $0x28] sm:$0xff]  }
   0x4   :  { %319 = vmatpush3.bf16.msra.mxu1 %v349_v4 }
   0x5   :  { %320 = vmatprep.subr.bf16.mxu1 %v381_v1 }
   0x6   :  { %301 = vmatpush3.bf16.msra.mxu0 %v342_v2 }
   0x7   :  { %302 = vmatprep.subr.bf16.mxu0 %v381_v1 }
   0x8   :  { %321 = vmatpush3.bf16.msra.mxu1 %v350_v6 }
   0xa   :  { %303 = vmatpush3.bf16.msra.mxu0 %v343_v3 }
   0xb   :  { %304 = vmatprep.subr.bf16.mxu0 %v381_v1 }
   0xe   :  { %305 = vmatpush3.bf16.msra.mxu0 %v344_v5 }
   0xf   :  { %306 = vmatprep.subr.bf16.mxu0 %v381_v1 }
  0x10   :  { %10 = vsyncpa [#allocation3], 0  ;;  %322 = vmatprep.subr.bf16.mxu1 %v381_v1  ;;  %v346_v9 = vld [vmem:[%s475_s1 + $0x10] sm:$0xff]   ;;  %v347_v10 = vld [vmem:[%s475_s1 + $0x8] sm:$0xff]  }
  0x11   :  { %323 = vmatpush3.bf16.msra.mxu1 %v351_v8  ;;  %v348_v11 = vld [vmem:[%s475_s1] sm:$0xff]   ;;  %v353_v14 = vld [vmem:[%s477_s3 + $0x18] sm:$0xff]   ;;  %v354_v15 = vld [vmem:[%s477_s3 + $0x10] sm:$0xff]  }
  0x12   :  { %307 = vmatpush3.bf16.msra.mxu0 %v345_v7  ;;  %324 = vmatprep.subr.bf16.mxu1 %v381_v1  ;;  %v22_v12 = vld [vmem:[%s474_s0] sm:$0x1]  ;;  %v355_v16 = vld [vmem:[%s477_s3 + $0x8] sm:$0xff]  }
  0x13   :  { %308 = vmatprep.subr.bf16.mxu0 %v381_v1  ;;  %v352_v13 = vld [vmem:[%s477_s3 + $0x20] sm:$0xff]  }
  0x14   :  { %v356_v17 = vld [vmem:[%s477_s3] sm:$0xff]   ;;  %s383_s3 = smov [#allocation2]  }
  0x15   :  { %325 = vmatpush3.bf16.msra.mxu1 %v352_v13  ;;  %v262_v18 = vld [vmem:[%s476_s2] ss:$0 sm:$0xff]  ;;  %s254_s29 = sshll.u32 %s383_s3, 4  ;;  %s255_s29 = int_to_ptr.vmem [resolvable:$true] %s254_s29 }
  0x16   :  { %309 = vmatpush3.bf16.msra.mxu0 %v346_v9  ;;  %326 = vmatprep.subr.bf16.mxu1 %v381_v1  ;;  %v271_v26 = vld [vmem:[%s478_s4] ss:$0 sm:$0xff]  ;;  %s359_s2 = scalar_lea.vmem %s255_s29, 32  ;;  %p364_p1 = scmp.lt.s32.totalorder %s255_s29, %s255_s29 }
  0x17   :  { %310 = vmatprep.subr.bf16.mxu0 %v381_v1  ;;  %p360_p0 = scmp.ne.s32.totalorder %s255_s29, %s359_s2  ;;  %p365_p2 = scmp.lt.s32.totalorder %s359_s2, %s359_s2 }
  0x19   :  { %327 = vmatpush3.bf16.msra.mxu1 %v353_v14  ;;  %p366_p3 = por %p365_p2, %p364_p1 }
  0x1a   :  { %311 = vmatpush3.bf16.msra.mxu0 %v347_v10  ;;  %328 = vmatprep.subr.bf16.mxu1 %v381_v1 }
  0x1b   :  { %312 = vmatprep.subr.bf16.mxu0 %v381_v1  ;;  %p367_p4 = pnand %p366_p3, %p360_p0 }
  0x1d   :  { %329 = vmatpush3.bf16.msra.mxu1 %v354_v15 }
  0x1e   :  { %313 = vmatpush3.bf16.msra.mxu0 %v348_v11  ;;  %330 = vmatprep.subr.bf16.mxu1 %v381_v1 }
  0x21   :  { %315 = vmatmul.mubr.bf16.vlgmr.msra.gmra.mxu0 %v22_v12  ;;  %331 = vmatpush3.bf16.msra.mxu1 %v355_v16 }
  0x22   :  { %332 = vmatprep.subr.bf16.mxu1 %v381_v1 }
  0x25   :  { %333 = vmatpush3.bf16.msra.mxu1 %v356_v17 }
  0xe1   :  { %v128_v19 = vpop.f32.mrf.mxu0 }
  0xe2   :  { %v129_v20 = vadd.f32 %v262_v18, %v128_v19 }
  0xe3   :  { %v316_v21 = vpop.f32.mrf.mxu0 }
  0xe4   :  { %357 = vtanh.f32 %v129_v20 }
  0xe5   :  { %v131_v22 = vpop.f32.mrf.mxu0 }
  0xe7   :  { %v317_v23 = vpop.f32.mrf.mxu0 }
  0xf1   :  { %v358_v24 = vpop.eup %357 }
  0xf2   :  { %v135_v25 = vpack.c.bf16 %v358_v24, %v358_v24 }
  0xf4   :  { %335 = vmatmul.mubr.bf16.vlgmr.msra.gmra.mxu1 %v135_v25 }
 0x1b4   :  { %v241_v27 = vpop.f32.mrf.mxu1 }
 0x1b5   :  { %v242_v28 = vadd.f32 %v271_v26, %v241_v27 }
 0x1b6   :  { %v336_v29 = vpop.f32.mrf.mxu1 }
 0x1b7   :  { %247 = vst [vmem:[#allocation2] sm:$0x3] %v242_v28 }
 0x1b8   :  { %v244_v30 = vpop.f32.mrf.mxu1 }
 0x1b9   :  { %370 = shalt.err (!%p367_p4)
}
 0x1ba   :  { %257 = dma.vmem_to_hbm [thread:$0]  %s255_s29, 32, %s479_s5, [#allocation3]   ;;  %v337_v31 = vpop.f32.mrf.mxu1 }
 0x1bb   :  { %379 = dma.done.wait [#allocation3], 32  }
 0x1bc   :  { %380 = vsyncadd [#allocation3], 4294967264 }
 0x1bd   :  { %261 = vsyncpa [#allocation3], 1 }

</bundles_post_ra>
